<compile_context>
chip_gen: v7x
topology: tpu7x:2x2x1
jax: 0.10.0
libtpu: 0.0.40
codegen_flags: <defaults>
</compile_context>

<pallas_src>
import math
import functools

import jax
import jax.numpy as jnp
from jax.experimental import pallas as pl
from jax.experimental.pallas import tpu as pltpu

# ----------------------------- hyperparameters (small) -----------------------------
D_MODEL = 32
D_FF = 64
D_K = 8
D_V = 8
N_HEADS = 4
N_LAYERS = 2
SRC_VOCAB = 16
TGT_VOCAB = 16
LN_EPS = 1e-5


# ----------------------------- shared in-kernel helpers -----------------------------
def _layernorm(y):
    # torch nn.LayerNorm(d_model) default: eps=1e-5, weight=1, bias=0
    # TODO(synk): affine weight/bias omitted (identity at init; a trained checkpoint would need them).
    mean = jnp.mean(y, axis=-1, keepdims=True)
    var = jnp.mean((y - mean) ** 2, axis=-1, keepdims=True)
    return (y - mean) * jax.lax.rsqrt(var + LN_EPS)


# ----------------------------- fused multi-head attention layer -----------------------------
def _mha_layer_kernel(xq_ref, xkv_ref, padk_ref,
                      wq_ref, wk_ref, wv_ref, wo_ref,
                      out_ref, attn_ref, *, causal, scale):
    Lq, D = xq_ref.shape[1], xq_ref.shape[2]
    Lk = xkv_ref.shape[1]
    xq = xq_ref[0]                       # (Lq, D)
    xkv = xkv_ref[0]                     # (Lk, D)

    # Fused Q/K/V projections for ALL heads (stay in VMEM).
    q_all = jnp.dot(xq, wq_ref[...], preferred_element_type=jnp.float32)    # (Lq, H*dk)
    k_all = jnp.dot(xkv, wk_ref[...], preferred_element_type=jnp.float32)   # (Lk, H*dk)
    v_all = jnp.dot(xkv, wv_ref[...], preferred_element_type=jnp.float32)   # (Lk, H*dv)

    # Rebuild the attention mask in-kernel (no (B*H, Lq, Lk) mask DMA).
    pad = padk_ref[0] > 0.5                                   # (1, Lk) bool
    mask = jnp.broadcast_to(pad, (Lq, Lk))
    if causal:
        rows = jax.lax.broadcasted_iota(jnp.int32, (Lq, Lk), 0)
        cols = jax.lax.broadcasted_iota(jnp.int32, (Lq, Lk), 1)
        mask = jnp.logical_or(mask, cols > rows)

    o = jnp.zeros((Lq, D), jnp.float32)
    for h in range(N_HEADS):             # static, unrolled head loop (all in one kernel)
        q_h = q_all[:, h * D_K:(h + 1) * D_K]                 # (Lq, dk)
        k_h = k_all[:, h * D_K:(h + 1) * D_K]                 # (Lk, dk)
        v_h = v_all[:, h * D_V:(h + 1) * D_V]                 # (Lk, dv)
        s = jnp.dot(q_h, k_h.T, preferred_element_type=jnp.float32) * scale
        s = jnp.where(mask, jnp.float32(-1e9), s)             # masked_fill(mask, -1e9)
        m = jnp.max(s, axis=-1, keepdims=True)
        e = jnp.exp(s - m)
        p = e * pl.reciprocal(jnp.sum(e, axis=-1, keepdims=True), approx=True)
        attn_ref[0, h * Lq:(h + 1) * Lq, :] = p               # diagnostics output
        ctx_h = jnp.dot(p, v_h, preferred_element_type=jnp.float32)          # (Lq, dv)
        # Per-head slice of the output projection == concat(ctx_heads) @ W_O
        o = o + jnp.dot(ctx_h, wo_ref[h * D_V:(h + 1) * D_V, :],
                        preferred_element_type=jnp.float32)

    # Fused residual add + LayerNorm.
    out_ref[0] = _layernorm(o + xq)


def fused_mha_layer(x_q, x_kv, pad_k, wq, wk, wv, wo, *, causal):
    """x_q: (B, Lq, D), x_kv: (B, Lk, D), pad_k: (B, 1, Lk) float (1.0 = PAD key)."""
    B, Lq, D = x_q.shape
    Lk = x_kv.shape[1]
    out, attn = pl.pallas_call(
        functools.partial(_mha_layer_kernel, causal=causal,
                          scale=1.0 / math.sqrt(D_K)),
        out_shape=(jax.ShapeDtypeStruct((B, Lq, D), jnp.float32),
                   jax.ShapeDtypeStruct((B, N_HEADS * Lq, Lk), jnp.float32)),
        grid=(B,),
        in_specs=[pl.BlockSpec((1, Lq, D), lambda b: (b, 0, 0)),
                  pl.BlockSpec((1, Lk, D), lambda b: (b, 0, 0)),
                  pl.BlockSpec((1, 1, Lk), lambda b: (b, 0, 0)),
                  pl.BlockSpec(wq.shape, lambda b: (0, 0)),
                  pl.BlockSpec(wk.shape, lambda b: (0, 0)),
                  pl.BlockSpec(wv.shape, lambda b: (0, 0)),
                  pl.BlockSpec(wo.shape, lambda b: (0, 0))],
        out_specs=(pl.BlockSpec((1, Lq, D), lambda b: (b, 0, 0)),
                   pl.BlockSpec((1, N_HEADS * Lq, Lk), lambda b: (b, 0, 0))),
        compiler_params=pltpu.CompilerParams(dimension_semantics=("parallel",)),
    )(x_q, x_kv, pad_k, wq, wk, wv, wo)
    return out, attn.reshape(B, N_HEADS, Lq, Lk)


# ----------------------------- fused position-wise FFN layer -----------------------------
def _ffn_layer_kernel(x_ref, w1_ref, w2_ref, out_ref):
    x = x_ref[0]                                              # (L, D)
    h = jnp.maximum(jnp.dot(x, w1_ref[...], preferred_element_type=jnp.float32), 0.0)
    o = jnp.dot(h, w2_ref[...], preferred_element_type=jnp.float32)
    out_ref[0] = _layernorm(o + x)                            # fused residual + LN


def fused_ffn_layer(x, w1, w2):
    B, L, D = x.shape
    return pl.pallas_call(
        _ffn_layer_kernel,
        out_shape=jax.ShapeDtypeStruct((B, L, D), jnp.float32),
        grid=(B,),
        in_specs=[pl.BlockSpec((1, L, D), lambda b: (b, 0, 0)),
                  pl.BlockSpec(w1.shape, lambda b: (0, 0)),
                  pl.BlockSpec(w2.shape, lambda b: (0, 0))],
        out_specs=pl.BlockSpec((1, L, D), lambda b: (b, 0, 0)),
        compiler_params=pltpu.CompilerParams(dimension_semantics=("parallel",)),
    )(x, w1, w2)


# ----------------------------- final projection -----------------------------
def _proj_kernel(x_ref, w_ref, o_ref):
    o_ref[...] = jnp.dot(x_ref[...], w_ref[...], preferred_element_type=jnp.float32)


def pallas_projection(x2d, w):
    M, _ = x2d.shape
    N = w.shape[1]
    return pl.pallas_call(
        _proj_kernel,
        out_shape=jax.ShapeDtypeStruct((M, N), jnp.float32),
    )(x2d, w)


# ----------------------------- model glue (plain JAX) -----------------------------
def positional_encoding(max_len, d_model):
    pos = jnp.arange(max_len, dtype=jnp.float32)[:, None]
    div = jnp.exp(jnp.arange(0, d_model, 2, dtype=jnp.float32)
                  * (-math.log(10000.0) / d_model))
    pe = jnp.zeros((max_len, d_model), dtype=jnp.float32)
    pe = pe.at[:, 0::2].set(jnp.sin(pos * div))
    pe = pe.at[:, 1::2].set(jnp.cos(pos * div))
    return pe
# TODO(synk): PositionalEncoding's nn.Dropout is identity in eval mode; omitted.


def pad_flags(seq_k):
    # (B, 1, Lk) float32, 1.0 where PAD token (id == 0)
    return (seq_k == 0).astype(jnp.float32)[:, None, :]


def encoder(params, enc_inputs):
    B, L = enc_inputs.shape
    x = params['src_emb'][enc_inputs] + positional_encoding(L, D_MODEL)[None]
    pk = pad_flags(enc_inputs)
    attns = []
    for lp in params['enc_layers']:
        a = lp['self_attn']
        x, attn = fused_mha_layer(x, x, pk, a['W_Q'], a['W_K'], a['W_V'], a['fc'],
                                  causal=False)
        x = fused_ffn_layer(x, lp['ffn']['w1'], lp['ffn']['w2'])
        attns.append(attn)
    return x, attns


def decoder(params, dec_inputs, enc_inputs, enc_outputs):
    B, Lt = dec_inputs.shape
    x = params['tgt_emb'][dec_inputs] + positional_encoding(Lt, D_MODEL)[None]
    self_pk = pad_flags(dec_inputs)      # causal mask OR'd in-kernel (torch.gt(pad+subseq, 0))
    cross_pk = pad_flags(enc_inputs)
    self_attns, enc_attns = [], []
    for lp in params['dec_layers']:
        a1 = lp['self_attn']
        x, sa = fused_mha_layer(x, x, self_pk, a1['W_Q'], a1['W_K'], a1['W_V'],
                                a1['fc'], causal=True)
        a2 = lp['enc_attn']
        x, ca = fused_mha_layer(x, enc_outputs, cross_pk, a2['W_Q'], a2['W_K'],
                                a2['W_V'], a2['fc'], causal=False)
        x = fused_ffn_layer(x, lp['ffn']['w1'], lp['ffn']['w2'])
        self_attns.append(sa)
        enc_attns.append(ca)
    return x, self_attns, enc_attns


def transformer_forward(params, enc_inputs, dec_inputs):
    enc_outputs, enc_self_attns = encoder(params, enc_inputs)
    dec_outputs, dec_self_attns, dec_enc_attns = decoder(
        params, dec_inputs, enc_inputs, enc_outputs)
    B, Lt, _ = dec_outputs.shape
    # projection: Linear(d_model, tgt_vocab, bias=False); output already (-1, vocab)
    dec_logits = pallas_projection(dec_outputs.reshape(B * Lt, D_MODEL), params['proj'])
    return dec_logits, enc_self_attns, dec_self_attns, dec_enc_attns


# ----------------------------- deterministic parameter init -----------------------------
def init_params(key):
    keys = iter(jax.random.split(key, 256))

    def w(shape, scale=0.1):
        return jax.random.normal(next(keys), shape, jnp.float32) * scale

    def attn_params():
        return {'W_Q': w((D_MODEL, N_HEADS * D_K)),
                'W_K': w((D_MODEL, N_HEADS * D_K)),
                'W_V': w((D_MODEL, N_HEADS * D_V)),
                'fc': w((N_HEADS * D_V, D_MODEL))}

    def ffn_params():
        return {'w1': w((D_MODEL, D_FF)), 'w2': w((D_FF, D_MODEL))}

    return {
        'src_emb': w((SRC_VOCAB, D_MODEL), 1.0),
        'tgt_emb': w((TGT_VOCAB, D_MODEL), 1.0),
        'proj': w((D_MODEL, TGT_VOCAB)),
        'enc_layers': [{'self_attn': attn_params(), 'ffn': ffn_params()}
                       for _ in range(N_LAYERS)],
        'dec_layers': [{'self_attn': attn_params(), 'enc_attn': attn_params(),
                        'ffn': ffn_params()} for _ in range(N_LAYERS)],
    }


# ----------------------------- main -----------------------------
if __name__ == "__main__":
    key = jax.random.PRNGKey(0)
    pkey, ekey, dkey = jax.random.split(key, 3)
    params = init_params(pkey)

    B, Ls, Lt = 2, 8, 8
    enc_inputs = jax.random.randint(ekey, (B, Ls), 1, SRC_VOCAB, dtype=jnp.int32)
    dec_inputs = jax.random.randint(dkey, (B, Lt), 1, TGT_VOCAB, dtype=jnp.int32)
    # put a PAD (=0) token at the end of each sequence to exercise the pad masks
    enc_inputs = enc_inputs.at[:, -1].set(0)
    dec_inputs = dec_inputs.at[:, -1].set(0)

    fwd = jax.jit(transformer_forward)
    out = fwd(params, enc_inputs, dec_inputs)
    jax.block_until_ready(out)

    dec_logits = out[0]
    assert dec_logits.shape == (B * Lt, TGT_VOCAB)
    assert out[1][0].shape == (B, N_HEADS, Ls, Ls)   # enc_self_attns per layer
    assert out[2][0].shape == (B, N_HEADS, Lt, Lt)   # dec_self_attns per layer
    assert out[3][0].shape == (B, N_HEADS, Lt, Ls)   # dec_enc_attns per layer
    print("KERNEL_OK")
</pallas_src>

<mosaic_0001>
module attributes {stable_mosaic.version = 11 : i64} {
  func.func @_ffn_layer_kernel(%arg0: i32, %arg1: memref<1x8x32xf32, #tpu.memory_space<vmem>>, %arg2: memref<32x64xf32, #tpu.memory_space<vmem>>, %arg3: memref<64x32xf32, #tpu.memory_space<vmem>>, %arg4: memref<1x8x32xf32, #tpu.memory_space<vmem>>) attributes {dimension_semantics = [#tpu.dimension_semantics<parallel>], iteration_bounds = array<i64: 2>, scalar_prefetch = 0 : i64, scratch_operands = 0 : i64, tpu.core_type = #tpu.core_type<tc>, window_params = [{transform_indices = @transform_0, window_bounds = array<i64: 1, 8, 32>}, {pipeline_mode = #tpu.pipeline_mode<synchronous>, transform_indices = @transform_1, window_bounds = array<i64: 32, 64>}, {pipeline_mode = #tpu.pipeline_mode<synchronous>, transform_indices = @transform_2, window_bounds = array<i64: 64, 32>}, {transform_indices = @transform_3, window_bounds = array<i64: 1, 8, 32>}]} {
    %c0 = arith.constant 0 : index
    %c0_0 = arith.constant 0 : index
    %c0_1 = arith.constant 0 : index
    %0 = vector.load %arg1[%c0, %c0_0, %c0_1] : memref<1x8x32xf32, #tpu.memory_space<vmem>>, vector<1x8x32xf32>
    %1 = vector.shape_cast %0 : vector<1x8x32xf32> to vector<8x32xf32>
    %c0_2 = arith.constant 0 : index
    %c0_3 = arith.constant 0 : index
    %2 = vector.load %arg2[%c0_2, %c0_3] : memref<32x64xf32, #tpu.memory_space<vmem>>, vector<32x64xf32>
    %cst = arith.constant dense<0.000000e+00> : vector<8x64xf32>
    %3 = tpu.matmul %1, %2, %cst {dimension_numbers = #tpu.dot_dimension_numbers<[1], [0], [0], [1], [0, 0, 1, 1], [], []>} : vector<8x32xf32>, vector<32x64xf32>, vector<8x64xf32> -> vector<8x64xf32>
    %cst_4 = arith.constant 0.000000e+00 : f32
    %4 = vector.broadcast %cst_4 : f32 to vector<8x64xf32>
    %5 = arith.maximumf %3, %4 : vector<8x64xf32>
    %c0_5 = arith.constant 0 : index
    %c0_6 = arith.constant 0 : index
    %6 = vector.load %arg3[%c0_5, %c0_6] : memref<64x32xf32, #tpu.memory_space<vmem>>, vector<64x32xf32>
    %cst_7 = arith.constant dense<0.000000e+00> : vector<8x32xf32>
    %7 = tpu.matmul %5, %6, %cst_7 {dimension_numbers = #tpu.dot_dimension_numbers<[1], [0], [0], [1], [0, 0, 1, 1], [], []>} : vector<8x64xf32>, vector<64x32xf32>, vector<8x32xf32> -> vector<8x32xf32>
    %8 = arith.addf %7, %1 : vector<8x32xf32>
    %cst_8 = arith.constant dense<0.000000e+00> : vector<8xf32>
    %9 = vector.multi_reduction <add>, %8, %cst_8 [1] : vector<8x32xf32> to vector<8xf32>
    %10 = vector.shape_cast %9 : vector<8xf32> to vector<8x1xf32>
    %cst_9 = arith.constant 3.200000e+01 : f32
    %11 = vector.broadcast %cst_9 : f32 to vector<8x1xf32>
    %12 = arith.divf %10, %11 : vector<8x1xf32>
    %13 = vector.broadcast %12 : vector<8x1xf32> to vector<8x32xf32>
    %14 = arith.subf %8, %13 : vector<8x32xf32>
    %15 = arith.mulf %14, %14 : vector<8x32xf32>
    %cst_10 = arith.constant dense<0.000000e+00> : vector<8xf32>
    %16 = vector.multi_reduction <add>, %15, %cst_10 [1] : vector<8x32xf32> to vector<8xf32>
    %17 = vector.shape_cast %16 : vector<8xf32> to vector<8x1xf32>
    %cst_11 = arith.constant 3.200000e+01 : f32
    %18 = vector.broadcast %cst_11 : f32 to vector<8x1xf32>
    %19 = arith.divf %17, %18 : vector<8x1xf32>
    %20 = vector.broadcast %12 : vector<8x1xf32> to vector<8x32xf32>
    %21 = arith.subf %8, %20 : vector<8x32xf32>
    %cst_12 = arith.constant 9.99999974E-6 : f32
    %22 = vector.broadcast %cst_12 : f32 to vector<8x1xf32>
    %23 = arith.addf %19, %22 : vector<8x1xf32>
    %24 = math.rsqrt %23 : vector<8x1xf32>
    %25 = vector.broadcast %24 : vector<8x1xf32> to vector<8x32xf32>
    %26 = arith.mulf %21, %25 : vector<8x32xf32>
    %c0_13 = arith.constant 0 : index
    %c0_14 = arith.constant 0 : index
    %c0_15 = arith.constant 0 : index
    %27 = vector.load %arg4[%c0_13, %c0_14, %c0_15] : memref<1x8x32xf32, #tpu.memory_space<vmem>>, vector<1x8x32xf32>
    %28 = vector.shape_cast %27 : vector<1x8x32xf32> to vector<8x32xf32>
    %29 = vector.shape_cast %26 : vector<8x32xf32> to vector<1x8x32xf32>
    tpu.vector_store %arg4[%c0_13, %c0_14, %c0_15], %29 {strides = array<i32>} : memref<1x8x32xf32, #tpu.memory_space<vmem>>, vector<1x8x32xf32>,
    return
  }
  func.func @transform_0(%arg0: i32) -> (i32, i32, i32) {
    %c0_i32 = arith.constant 0 : i32
    %c0_i32_0 = arith.constant 0 : i32
    %c0_i32_1 = arith.constant 0 : i32
    return %arg0, %c0_i32, %c0_i32_0 : i32, i32, i32
  }
  func.func @transform_1(%arg0: i32) -> (i32, i32) {
    %c0_i32 = arith.constant 0 : i32
    %c0_i32_0 = arith.constant 0 : i32
    %c0_i32_1 = arith.constant 0 : i32
    return %c0_i32, %c0_i32_0 : i32, i32
  }
  func.func @transform_2(%arg0: i32) -> (i32, i32) {
    %c0_i32 = arith.constant 0 : i32
    %c0_i32_0 = arith.constant 0 : i32
    %c0_i32_1 = arith.constant 0 : i32
    return %c0_i32, %c0_i32_0 : i32, i32
  }
  func.func @transform_3(%arg0: i32) -> (i32, i32, i32) {
    %c0_i32 = arith.constant 0 : i32
    %c0_i32_0 = arith.constant 0 : i32
    %c0_i32_1 = arith.constant 0 : i32
    return %arg0, %c0_i32, %c0_i32_0 : i32, i32, i32
  }
}

module attributes {stable_mosaic.version = 11 : i64} {
  func.func @_mha_layer_kernel(%arg0: i32, %arg1: memref<1x8x32xf32, #tpu.memory_space<vmem>>, %arg2: memref<1x8x32xf32, #tpu.memory_space<vmem>>, %arg3: memref<1x1x8xf32, #tpu.memory_space<vmem>>, %arg4: memref<32x32xf32, #tpu.memory_space<vmem>>, %arg5: memref<32x32xf32, #tpu.memory_space<vmem>>, %arg6: memref<32x32xf32, #tpu.memory_space<vmem>>, %arg7: memref<32x32xf32, #tpu.memory_space<vmem>>, %arg8: memref<1x8x32xf32, #tpu.memory_space<vmem>>, %arg9: memref<1x32x8xf32, #tpu.memory_space<vmem>>) attributes {dimension_semantics = [#tpu.dimension_semantics<parallel>], iteration_bounds = array<i64: 2>, scalar_prefetch = 0 : i64, scratch_operands = 0 : i64, tpu.core_type = #tpu.core_type<tc>, window_params = [{transform_indices = @transform_0, window_bounds = array<i64: 1, 8, 32>}, {transform_indices = @transform_1, window_bounds = array<i64: 1, 8, 32>}, {transform_indices = @transform_2, window_bounds = array<i64: 1, 1, 8>}, {pipeline_mode = #tpu.pipeline_mode<synchronous>, transform_indices = @transform_3, window_bounds = array<i64: 32, 32>}, {pipeline_mode = #tpu.pipeline_mode<synchronous>, transform_indices = @transform_4, window_bounds = array<i64: 32, 32>}, {pipeline_mode = #tpu.pipeline_mode<synchronous>, transform_indices = @transform_5, window_bounds = array<i64: 32, 32>}, {pipeline_mode = #tpu.pipeline_mode<synchronous>, transform_indices = @transform_6, window_bounds = array<i64: 32, 32>}, {transform_indices = @transform_7, window_bounds = array<i64: 1, 8, 32>}, {transform_indices = @transform_8, window_bounds = array<i64: 1, 32, 8>}]} {
    %c0 = arith.constant 0 : index
    %c0_0 = arith.constant 0 : index
    %c0_1 = arith.constant 0 : index
    %0 = vector.load %arg1[%c0, %c0_0, %c0_1] : memref<1x8x32xf32, #tpu.memory_space<vmem>>, vector<1x8x32xf32>
    %1 = vector.shape_cast %0 : vector<1x8x32xf32> to vector<8x32xf32>
    %c0_2 = arith.constant 0 : index
    %c0_3 = arith.constant 0 : index
    %c0_4 = arith.constant 0 : index
    %2 = vector.load %arg2[%c0_2, %c0_3, %c0_4] : memref<1x8x32xf32, #tpu.memory_space<vmem>>, vector<1x8x32xf32>
    %3 = vector.shape_cast %2 : vector<1x8x32xf32> to vector<8x32xf32>
    %c0_5 = arith.constant 0 : index
    %c0_6 = arith.constant 0 : index
    %4 = vector.load %arg4[%c0_5, %c0_6] : memref<32x32xf32, #tpu.memory_space<vmem>>, vector<32x32xf32>
    %cst = arith.constant dense<0.000000e+00> : vector<8x32xf32>
    %5 = tpu.matmul %1, %4, %cst {dimension_numbers = #tpu.dot_dimension_numbers<[1], [0], [0], [1], [0, 0, 1, 1], [], []>} : vector<8x32xf32>, vector<32x32xf32>, vector<8x32xf32> -> vector<8x32xf32>
    %c0_7 = arith.constant 0 : index
    %c0_8 = arith.constant 0 : index
    %6 = vector.load %arg5[%c0_7, %c0_8] : memref<32x32xf32, #tpu.memory_space<vmem>>, vector<32x32xf32>
    %cst_9 = arith.constant dense<0.000000e+00> : vector<8x32xf32>
    %7 = tpu.matmul %3, %6, %cst_9 {dimension_numbers = #tpu.dot_dimension_numbers<[1], [0], [0], [1], [0, 0, 1, 1], [], []>} : vector<8x32xf32>, vector<32x32xf32>, vector<8x32xf32> -> vector<8x32xf32>
    %c0_10 = arith.constant 0 : index
    %c0_11 = arith.constant 0 : index
    %8 = vector.load %arg6[%c0_10, %c0_11] : memref<32x32xf32, #tpu.memory_space<vmem>>, vector<32x32xf32>
    %cst_12 = arith.constant dense<0.000000e+00> : vector<8x32xf32>
    %9 = tpu.matmul %3, %8, %cst_12 {dimension_numbers = #tpu.dot_dimension_numbers<[1], [0], [0], [1], [0, 0, 1, 1], [], []>} : vector<8x32xf32>, vector<32x32xf32>, vector<8x32xf32> -> vector<8x32xf32>
    %c0_13 = arith.constant 0 : index
    %c0_14 = arith.constant 0 : index
    %c0_15 = arith.constant 0 : index
    %10 = vector.load %arg3[%c0_13, %c0_14, %c0_15] : memref<1x1x8xf32, #tpu.memory_space<vmem>>, vector<1x1x8xf32>
    %11 = vector.shape_cast %10 : vector<1x1x8xf32> to vector<1x8xf32>
    %cst_16 = arith.constant 5.000000e-01 : f32
    %12 = vector.broadcast %cst_16 : f32 to vector<1x8xf32>
    %13 = arith.cmpf ogt, %11, %12 : vector<1x8xf32>
    %14 = vector.shape_cast %13 : vector<1x8xi1> to vector<1x8xi1>
    %15 = vector.broadcast %14 : vector<1x8xi1> to vector<8x8xi1>
    %cst_17 = arith.constant 0.000000e+00 : f32
    %16 = vector.broadcast %cst_17 : f32 to vector<8x32xf32>
    %17 = vector.extract_strided_slice %5 {offsets = [0, 0], sizes = [8, 8], strides = [1, 1]} : vector<8x32xf32> to vector<8x8xf32>
    %18 = vector.extract_strided_slice %7 {offsets = [0, 0], sizes = [8, 8], strides = [1, 1]} : vector<8x32xf32> to vector<8x8xf32>
    %19 = vector.extract_strided_slice %9 {offsets = [0, 0], sizes = [8, 8], strides = [1, 1]} : vector<8x32xf32> to vector<8x8xf32>
    %20 = tpu.transpose %18, [1, 0] : vector<8x8xf32> -> vector<8x8xf32>
    %cst_18 = arith.constant dense<0.000000e+00> : vector<8x8xf32>
    %21 = tpu.matmul %17, %20, %cst_18 {dimension_numbers = #tpu.dot_dimension_numbers<[1], [0], [0], [1], [0, 0, 1, 1], [], []>} : vector<8x8xf32>, vector<8x8xf32>, vector<8x8xf32> -> vector<8x8xf32>
    %cst_19 = arith.constant 0.353553385 : f32
    %22 = vector.broadcast %cst_19 : f32 to vector<8x8xf32>
    %23 = arith.mulf %21, %22 : vector<8x8xf32>
    %cst_20 = arith.constant -1.000000e+09 : f32
    %24 = vector.broadcast %cst_20 : f32 to vector<8x8xf32>
    %25 = arith.select %15, %24, %23 : vector<8x8xi1>, vector<8x8xf32>
    %cst_21 = arith.constant dense<0xFF800000> : vector<8xf32>
    %26 = vector.multi_reduction <maximumf>, %25, %cst_21 [1] : vector<8x8xf32> to vector<8xf32>
    %27 = vector.shape_cast %26 : vector<8xf32> to vector<8x1xf32>
    %28 = vector.broadcast %27 : vector<8x1xf32> to vector<8x8xf32>
    %29 = arith.subf %25, %28 : vector<8x8xf32>
    %30 = math.exp %29 : vector<8x8xf32>
    %cst_22 = arith.constant dense<0.000000e+00> : vector<8xf32>
    %31 = vector.multi_reduction <add>, %30, %cst_22 [1] : vector<8x8xf32> to vector<8xf32>
    %32 = vector.shape_cast %31 : vector<8xf32> to vector<8x1xf32>
    %33 = tpu.reciprocal %32 {approx = true} : vector<8x1xf32> -> vector<8x1xf32>
    %34 = vector.broadcast %33 : vector<8x1xf32> to vector<8x8xf32>
    %35 = arith.mulf %30, %34 : vector<8x8xf32>
    %c0_23 = arith.constant 0 : index
    %c0_24 = arith.constant 0 : index
    %c0_25 = arith.constant 0 : index
    %36 = vector.load %arg9[%c0_23, %c0_24, %c0_25] : memref<1x32x8xf32, #tpu.memory_space<vmem>>, vector<1x8x8xf32>
    %37 = vector.shape_cast %36 : vector<1x8x8xf32> to vector<8x8xf32>
    %38 = vector.shape_cast %35 : vector<8x8xf32> to vector<1x8x8xf32>
    tpu.vector_store %arg9[%c0_23, %c0_24, %c0_25], %38 {strides = array<i32>} : memref<1x32x8xf32, #tpu.memory_space<vmem>>, vector<1x8x8xf32>,
    %cst_26 = arith.constant dense<0.000000e+00> : vector<8x8xf32>
    %39 = tpu.matmul %35, %19, %cst_26 {dimension_numbers = #tpu.dot_dimension_numbers<[1], [0], [0], [1], [0, 0, 1, 1], [], []>} : vector<8x8xf32>, vector<8x8xf32>, vector<8x8xf32> -> vector<8x8xf32>
    %c0_27 = arith.constant 0 : index
    %c0_28 = arith.constant 0 : index
    %40 = vector.load %arg7[%c0_27, %c0_28] : memref<32x32xf32, #tpu.memory_space<vmem>>, vector<8x32xf32>
    %cst_29 = arith.constant dense<0.000000e+00> : vector<8x32xf32>
    %41 = tpu.matmul %39, %40, %cst_29 {dimension_numbers = #tpu.dot_dimension_numbers<[1], [0], [0], [1], [0, 0, 1, 1], [], []>} : vector<8x8xf32>, vector<8x32xf32>, vector<8x32xf32> -> vector<8x32xf32>
    %42 = arith.addf %16, %41 : vector<8x32xf32>
    %43 = vector.extract_strided_slice %5 {offsets = [0, 8], sizes = [8, 8], strides = [1, 1]} : vector<8x32xf32> to vector<8x8xf32>
    %44 = vector.extract_strided_slice %7 {offsets = [0, 8], sizes = [8, 8], strides = [1, 1]} : vector<8x32xf32> to vector<8x8xf32>
    %45 = vector.extract_strided_slice %9 {offsets = [0, 8], sizes = [8, 8], strides = [1, 1]} : vector<8x32xf32> to vector<8x8xf32>
    %46 = tpu.transpose %44, [1, 0] : vector<8x8xf32> -> vector<8x8xf32>
    %cst_30 = arith.constant dense<0.000000e+00> : vector<8x8xf32>
    %47 = tpu.matmul %43, %46, %cst_30 {dimension_numbers = #tpu.dot_dimension_numbers<[1], [0], [0], [1], [0, 0, 1, 1], [], []>} : vector<8x8xf32>, vector<8x8xf32>, vector<8x8xf32> -> vector<8x8xf32>
    %cst_31 = arith.constant 0.353553385 : f32
    %48 = vector.broadcast %cst_31 : f32 to vector<8x8xf32>
    %49 = arith.mulf %47, %48 : vector<8x8xf32>
    %cst_32 = arith.constant -1.000000e+09 : f32
    %50 = vector.broadcast %cst_32 : f32 to vector<8x8xf32>
    %51 = arith.select %15, %50, %49 : vector<8x8xi1>, vector<8x8xf32>
    %cst_33 = arith.constant dense<0xFF800000> : vector<8xf32>
    %52 = vector.multi_reduction <maximumf>, %51, %cst_33 [1] : vector<8x8xf32> to vector<8xf32>
    %53 = vector.shape_cast %52 : vector<8xf32> to vector<8x1xf32>
    %54 = vector.broadcast %53 : vector<8x1xf32> to vector<8x8xf32>
    %55 = arith.subf %51, %54 : vector<8x8xf32>
    %56 = math.exp %55 : vector<8x8xf32>
    %cst_34 = arith.constant dense<0.000000e+00> : vector<8xf32>
    %57 = vector.multi_reduction <add>, %56, %cst_34 [1] : vector<8x8xf32> to vector<8xf32>
    %58 = vector.shape_cast %57 : vector<8xf32> to vector<8x1xf32>
    %59 = tpu.reciprocal %58 {approx = true} : vector<8x1xf32> -> vector<8x1xf32>
    %60 = vector.broadcast %59 : vector<8x1xf32> to vector<8x8xf32>
    %61 = arith.mulf %56, %60 : vector<8x8xf32>
    %c0_35 = arith.constant 0 : index
    %c8 = arith.constant 8 : index
    %c0_36 = arith.constant 0 : index
    %62 = vector.load %arg9[%c0_35, %c8, %c0_36] : memref<1x32x8xf32, #tpu.memory_space<vmem>>, vector<1x8x8xf32>
    %63 = vector.shape_cast %62 : vector<1x8x8xf32> to vector<8x8xf32>
    %64 = vector.shape_cast %61 : vector<8x8xf32> to vector<1x8x8xf32>
    tpu.vector_store %arg9[%c0_35, %c8, %c0_36], %64 {strides = array<i32>} : memref<1x32x8xf32, #tpu.memory_space<vmem>>, vector<1x8x8xf32>,
    %cst_37 = arith.constant dense<0.000000e+00> : vector<8x8xf32>
    %65 = tpu.matmul %61, %45, %cst_37 {dimension_numbers = #tpu.dot_dimension_numbers<[1], [0], [0], [1], [0, 0, 1, 1], [], []>} : vector<8x8xf32>, vector<8x8xf32>, vector<8x8xf32> -> vector<8x8xf32>
    %c8_38 = arith.constant 8 : index
    %c0_39 = arith.constant 0 : index
    %66 = vector.load %arg7[%c8_38, %c0_39] : memref<32x32xf32, #tpu.memory_space<vmem>>, vector<8x32xf32>
    %cst_40 = arith.constant dense<0.000000e+00> : vector<8x32xf32>
    %67 = tpu.matmul %65, %66, %cst_40 {dimension_numbers = #tpu.dot_dimension_numbers<[1], [0], [0], [1], [0, 0, 1, 1], [], []>} : vector<8x8xf32>, vector<8x32xf32>, vector<8x32xf32> -> vector<8x32xf32>
    %68 = arith.addf %42, %67 : vector<8x32xf32>
    %69 = vector.extract_strided_slice %5 {offsets = [0, 16], sizes = [8, 8], strides = [1, 1]} : vector<8x32xf32> to vector<8x8xf32>
    %70 = vector.extract_strided_slice %7 {offsets = [0, 16], sizes = [8, 8], strides = [1, 1]} : vector<8x32xf32> to vector<8x8xf32>
    %71 = vector.extract_strided_slice %9 {offsets = [0, 16], sizes = [8, 8], strides = [1, 1]} : vector<8x32xf32> to vector<8x8xf32>
    %72 = tpu.transpose %70, [1, 0] : vector<8x8xf32> -> vector<8x8xf32>
    %cst_41 = arith.constant dense<0.000000e+00> : vector<8x8xf32>
    %73 = tpu.matmul %69, %72, %cst_41 {dimension_numbers = #tpu.dot_dimension_numbers<[1], [0], [0], [1], [0, 0, 1, 1], [], []>} : vector<8x8xf32>, vector<8x8xf32>, vector<8x8xf32> -> vector<8x8xf32>
    %cst_42 = arith.constant 0.353553385 : f32
    %74 = vector.broadcast %cst_42 : f32 to vector<8x8xf32>
    %75 = arith.mulf %73, %74 : vector<8x8xf32>
    %cst_43 = arith.constant -1.000000e+09 : f32
    %76 = vector.broadcast %cst_43 : f32 to vector<8x8xf32>
    %77 = arith.select %15, %76, %75 : vector<8x8xi1>, vector<8x8xf32>
    %cst_44 = arith.constant dense<0xFF800000> : vector<8xf32>
    %78 = vector.multi_reduction <maximumf>, %77, %cst_44 [1] : vector<8x8xf32> to vector<8xf32>
    %79 = vector.shape_cast %78 : vector<8xf32> to vector<8x1xf32>
    %80 = vector.broadcast %79 : vector<8x1xf32> to vector<8x8xf32>
    %81 = arith.subf %77, %80 : vector<8x8xf32>
    %82 = math.exp %81 : vector<8x8xf32>
    %cst_45 = arith.constant dense<0.000000e+00> : vector<8xf32>
    %83 = vector.multi_reduction <add>, %82, %cst_45 [1] : vector<8x8xf32> to vector<8xf32>
    %84 = vector.shape_cast %83 : vector<8xf32> to vector<8x1xf32>
    %85 = tpu.reciprocal %84 {approx = true} : vector<8x1xf32> -> vector<8x1xf32>
    %86 = vector.broadcast %85 : vector<8x1xf32> to vector<8x8xf32>
    %87 = arith.mulf %82, %86 : vector<8x8xf32>
    %c0_46 = arith.constant 0 : index
    %c16 = arith.constant 16 : index
    %c0_47 = arith.constant 0 : index
    %88 = vector.load %arg9[%c0_46, %c16, %c0_47] : memref<1x32x8xf32, #tpu.memory_space<vmem>>, vector<1x8x8xf32>
    %89 = vector.shape_cast %88 : vector<1x8x8xf32> to vector<8x8xf32>
    %90 = vector.shape_cast %87 : vector<8x8xf32> to vector<1x8x8xf32>
    tpu.vector_store %arg9[%c0_46, %c16, %c0_47], %90 {strides = array<i32>} : memref<1x32x8xf32, #tpu.memory_space<vmem>>, vector<1x8x8xf32>,
    %cst_48 = arith.constant dense<0.000000e+00> : vector<8x8xf32>
    %91 = tpu.matmul %87, %71, %cst_48 {dimension_numbers = #tpu.dot_dimension_numbers<[1], [0], [0], [1], [0, 0, 1, 1], [], []>} : vector<8x8xf32>, vector<8x8xf32>, vector<8x8xf32> -> vector<8x8xf32>
    %c16_49 = arith.constant 16 : index
    %c0_50 = arith.constant 0 : index
    %92 = vector.load %arg7[%c16_49, %c0_50] : memref<32x32xf32, #tpu.memory_space<vmem>>, vector<8x32xf32>
    %cst_51 = arith.constant dense<0.000000e+00> : vector<8x32xf32>
    %93 = tpu.matmul %91, %92, %cst_51 {dimension_numbers = #tpu.dot_dimension_numbers<[1], [0], [0], [1], [0, 0, 1, 1], [], []>} : vector<8x8xf32>, vector<8x32xf32>, vector<8x32xf32> -> vector<8x32xf32>
    %94 = arith.addf %68, %93 : vector<8x32xf32>
    %95 = vector.extract_strided_slice %5 {offsets = [0, 24], sizes = [8, 8], strides = [1, 1]} : vector<8x32xf32> to vector<8x8xf32>
    %96 = vector.extract_strided_slice %7 {offsets = [0, 24], sizes = [8, 8], strides = [1, 1]} : vector<8x32xf32> to vector<8x8xf32>
    %97 = vector.extract_strided_slice %9 {offsets = [0, 24], sizes = [8, 8], strides = [1, 1]} : vector<8x32xf32> to vector<8x8xf32>
    %98 = tpu.transpose %96, [1, 0] : vector<8x8xf32> -> vector<8x8xf32>
    %cst_52 = arith.constant dense<0.000000e+00> : vector<8x8xf32>
    %99 = tpu.matmul %95, %98, %cst_52 {dimension_numbers = #tpu.dot_dimension_numbers<[1], [0], [0], [1], [0, 0, 1, 1], [], []>} : vector<8x8xf32>, vector<8x8xf32>, vector<8x8xf32> -> vector<8x8xf32>
    %cst_53 = arith.constant 0.353553385 : f32
    %100 = vector.broadcast %cst_53 : f32 to vector<8x8xf32>
    %101 = arith.mulf %99, %100 : vector<8x8xf32>
    %cst_54 = arith.constant -1.000000e+09 : f32
    %102 = vector.broadcast %cst_54 : f32 to vector<8x8xf32>
    %103 = arith.select %15, %102, %101 : vector<8x8xi1>, vector<8x8xf32>
    %cst_55 = arith.constant dense<0xFF800000> : vector<8xf32>
    %104 = vector.multi_reduction <maximumf>, %103, %cst_55 [1] : vector<8x8xf32> to vector<8xf32>
    %105 = vector.shape_cast %104 : vector<8xf32> to vector<8x1xf32>
    %106 = vector.broadcast %105 : vector<8x1xf32> to vector<8x8xf32>
    %107 = arith.subf %103, %106 : vector<8x8xf32>
    %108 = math.exp %107 : vector<8x8xf32>
    %cst_56 = arith.constant dense<0.000000e+00> : vector<8xf32>
    %109 = vector.multi_reduction <add>, %108, %cst_56 [1] : vector<8x8xf32> to vector<8xf32>
    %110 = vector.shape_cast %109 : vector<8xf32> to vector<8x1xf32>
    %111 = tpu.reciprocal %110 {approx = true} : vector<8x1xf32> -> vector<8x1xf32>
    %112 = vector.broadcast %111 : vector<8x1xf32> to vector<8x8xf32>
    %113 = arith.mulf %108, %112 : vector<8x8xf32>
    %c0_57 = arith.constant 0 : index
    %c24 = arith.constant 24 : index
    %c0_58 = arith.constant 0 : index
    %114 = vector.load %arg9[%c0_57, %c24, %c0_58] : memref<1x32x8xf32, #tpu.memory_space<vmem>>, vector<1x8x8xf32>
    %115 = vector.shape_cast %114 : vector<1x8x8xf32> to vector<8x8xf32>
    %116 = vector.shape_cast %113 : vector<8x8xf32> to vector<1x8x8xf32>
    tpu.vector_store %arg9[%c0_57, %c24, %c0_58], %116 {strides = array<i32>} : memref<1x32x8xf32, #tpu.memory_space<vmem>>, vector<1x8x8xf32>,
    %cst_59 = arith.constant dense<0.000000e+00> : vector<8x8xf32>
    %117 = tpu.matmul %113, %97, %cst_59 {dimension_numbers = #tpu.dot_dimension_numbers<[1], [0], [0], [1], [0, 0, 1, 1], [], []>} : vector<8x8xf32>, vector<8x8xf32>, vector<8x8xf32> -> vector<8x8xf32>
    %c24_60 = arith.constant 24 : index
    %c0_61 = arith.constant 0 : index
    %118 = vector.load %arg7[%c24_60, %c0_61] : memref<32x32xf32, #tpu.memory_space<vmem>>, vector<8x32xf32>
    %cst_62 = arith.constant dense<0.000000e+00> : vector<8x32xf32>
    %119 = tpu.matmul %117, %118, %cst_62 {dimension_numbers = #tpu.dot_dimension_numbers<[1], [0], [0], [1], [0, 0, 1, 1], [], []>} : vector<8x8xf32>, vector<8x32xf32>, vector<8x32xf32> -> vector<8x32xf32>
    %120 = arith.addf %94, %119 : vector<8x32xf32>
    %121 = arith.addf %120, %1 : vector<8x32xf32>
    %cst_63 = arith.constant dense<0.000000e+00> : vector<8xf32>
    %122 = vector.multi_reduction <add>, %121, %cst_63 [1] : vector<8x32xf32> to vector<8xf32>
    %123 = vector.shape_cast %122 : vector<8xf32> to vector<8x1xf32>
    %cst_64 = arith.constant 3.200000e+01 : f32
    %124 = vector.broadcast %cst_64 : f32 to vector<8x1xf32>
    %125 = arith.divf %123, %124 : vector<8x1xf32>
    %126 = vector.broadcast %125 : vector<8x1xf32> to vector<8x32xf32>
    %127 = arith.subf %121, %126 : vector<8x32xf32>
    %128 = arith.mulf %127, %127 : vector<8x32xf32>
    %cst_65 = arith.constant dense<0.000000e+00> : vector<8xf32>
    %129 = vector.multi_reduction <add>, %128, %cst_65 [1] : vector<8x32xf32> to vector<8xf32>
    %130 = vector.shape_cast %129 : vector<8xf32> to vector<8x1xf32>
    %cst_66 = arith.constant 3.200000e+01 : f32
    %131 = vector.broadcast %cst_66 : f32 to vector<8x1xf32>
    %132 = arith.divf %130, %131 : vector<8x1xf32>
    %133 = vector.broadcast %125 : vector<8x1xf32> to vector<8x32xf32>
    %134 = arith.subf %121, %133 : vector<8x32xf32>
    %cst_67 = arith.constant 9.99999974E-6 : f32
    %135 = vector.broadcast %cst_67 : f32 to vector<8x1xf32>
    %136 = arith.addf %132, %135 : vector<8x1xf32>
    %137 = math.rsqrt %136 : vector<8x1xf32>
    %138 = vector.broadcast %137 : vector<8x1xf32> to vector<8x32xf32>
    %139 = arith.mulf %134, %138 : vector<8x32xf32>
    %c0_68 = arith.constant 0 : index
    %c0_69 = arith.constant 0 : index
    %c0_70 = arith.constant 0 : index
    %140 = vector.load %arg8[%c0_68, %c0_69, %c0_70] : memref<1x8x32xf32, #tpu.memory_space<vmem>>, vector<1x8x32xf32>
    %141 = vector.shape_cast %140 : vector<1x8x32xf32> to vector<8x32xf32>
    %142 = vector.shape_cast %139 : vector<8x32xf32> to vector<1x8x32xf32>
    tpu.vector_store %arg8[%c0_68, %c0_69, %c0_70], %142 {strides = array<i32>} : memref<1x8x32xf32, #tpu.memory_space<vmem>>, vector<1x8x32xf32>,
    return
  }
  func.func @transform_0(%arg0: i32) -> (i32, i32, i32) {
    %c0_i32 = arith.constant 0 : i32
    %c0_i32_0 = arith.constant 0 : i32
    %c0_i32_1 = arith.constant 0 : i32
    return %arg0, %c0_i32, %c0_i32_0 : i32, i32, i32
  }
  func.func @transform_1(%arg0: i32) -> (i32, i32, i32) {
    %c0_i32 = arith.constant 0 : i32
    %c0_i32_0 = arith.constant 0 : i32
    %c0_i32_1 = arith.constant 0 : i32
    return %arg0, %c0_i32, %c0_i32_0 : i32, i32, i32
  }
  func.func @transform_2(%arg0: i32) -> (i32, i32, i32) {
    %c0_i32 = arith.constant 0 : i32
    %c0_i32_0 = arith.constant 0 : i32
    %c0_i32_1 = arith.constant 0 : i32
    return %arg0, %c0_i32, %c0_i32_0 : i32, i32, i32
  }
  func.func @transform_3(%arg0: i32) -> (i32, i32) {
    %c0_i32 = arith.constant 0 : i32
    %c0_i32_0 = arith.constant 0 : i32
    %c0_i32_1 = arith.constant 0 : i32
    return %c0_i32, %c0_i32_0 : i32, i32
  }
  func.func @transform_4(%arg0: i32) -> (i32, i32) {
    %c0_i32 = arith.constant 0 : i32
    %c0_i32_0 = arith.constant 0 : i32
    %c0_i32_1 = arith.constant 0 : i32
    return %c0_i32, %c0_i32_0 : i32, i32
  }
  func.func @transform_5(%arg0: i32) -> (i32, i32) {
    %c0_i32 = arith.constant 0 : i32
    %c0_i32_0 = arith.constant 0 : i32
    %c0_i32_1 = arith.constant 0 : i32
    return %c0_i32, %c0_i32_0 : i32, i32
  }
  func.func @transform_6(%arg0: i32) -> (i32, i32) {
    %c0_i32 = arith.constant 0 : i32
    %c0_i32_0 = arith.constant 0 : i32
    %c0_i32_1 = arith.constant 0 : i32
    return %c0_i32, %c0_i32_0 : i32, i32
  }
  func.func @transform_7(%arg0: i32) -> (i32, i32, i32) {
    %c0_i32 = arith.constant 0 : i32
    %c0_i32_0 = arith.constant 0 : i32
    %c0_i32_1 = arith.constant 0 : i32
    return %arg0, %c0_i32, %c0_i32_0 : i32, i32, i32
  }
  func.func @transform_8(%arg0: i32) -> (i32, i32, i32) {
    %c0_i32 = arith.constant 0 : i32
    %c0_i32_0 = arith.constant 0 : i32
    %c0_i32_1 = arith.constant 0 : i32
    return %arg0, %c0_i32, %c0_i32_0 : i32, i32, i32
  }
}

module attributes {stable_mosaic.version = 11 : i64} {
  func.func @_mha_layer_kernel(%arg0: i32, %arg1: memref<1x8x32xf32, #tpu.memory_space<vmem>>, %arg2: memref<1x8x32xf32, #tpu.memory_space<vmem>>, %arg3: memref<1x1x8xf32, #tpu.memory_space<vmem>>, %arg4: memref<32x32xf32, #tpu.memory_space<vmem>>, %arg5: memref<32x32xf32, #tpu.memory_space<vmem>>, %arg6: memref<32x32xf32, #tpu.memory_space<vmem>>, %arg7: memref<32x32xf32, #tpu.memory_space<vmem>>, %arg8: memref<1x8x32xf32, #tpu.memory_space<vmem>>, %arg9: memref<1x32x8xf32, #tpu.memory_space<vmem>>) attributes {dimension_semantics = [#tpu.dimension_semantics<parallel>], iteration_bounds = array<i64: 2>, scalar_prefetch = 0 : i64, scratch_operands = 0 : i64, tpu.core_type = #tpu.core_type<tc>, window_params = [{transform_indices = @transform_0, window_bounds = array<i64: 1, 8, 32>}, {transform_indices = @transform_1, window_bounds = array<i64: 1, 8, 32>}, {transform_indices = @transform_2, window_bounds = array<i64: 1, 1, 8>}, {pipeline_mode = #tpu.pipeline_mode<synchronous>, transform_indices = @transform_3, window_bounds = array<i64: 32, 32>}, {pipeline_mode = #tpu.pipeline_mode<synchronous>, transform_indices = @transform_4, window_bounds = array<i64: 32, 32>}, {pipeline_mode = #tpu.pipeline_mode<synchronous>, transform_indices = @transform_5, window_bounds = array<i64: 32, 32>}, {pipeline_mode = #tpu.pipeline_mode<synchronous>, transform_indices = @transform_6, window_bounds = array<i64: 32, 32>}, {transform_indices = @transform_7, window_bounds = array<i64: 1, 8, 32>}, {transform_indices = @transform_8, window_bounds = array<i64: 1, 32, 8>}]} {
    %c0 = arith.constant 0 : index
    %c0_0 = arith.constant 0 : index
    %c0_1 = arith.constant 0 : index
    %0 = vector.load %arg1[%c0, %c0_0, %c0_1] : memref<1x8x32xf32, #tpu.memory_space<vmem>>, vector<1x8x32xf32>
    %1 = vector.shape_cast %0 : vector<1x8x32xf32> to vector<8x32xf32>
    %c0_2 = arith.constant 0 : index
    %c0_3 = arith.constant 0 : index
    %c0_4 = arith.constant 0 : index
    %2 = vector.load %arg2[%c0_2, %c0_3, %c0_4] : memref<1x8x32xf32, #tpu.memory_space<vmem>>, vector<1x8x32xf32>
    %3 = vector.shape_cast %2 : vector<1x8x32xf32> to vector<8x32xf32>
    %c0_5 = arith.constant 0 : index
    %c0_6 = arith.constant 0 : index
    %4 = vector.load %arg4[%c0_5, %c0_6] : memref<32x32xf32, #tpu.memory_space<vmem>>, vector<32x32xf32>
    %cst = arith.constant dense<0.000000e+00> : vector<8x32xf32>
    %5 = tpu.matmul %1, %4, %cst {dimension_numbers = #tpu.dot_dimension_numbers<[1], [0], [0], [1], [0, 0, 1, 1], [], []>} : vector<8x32xf32>, vector<32x32xf32>, vector<8x32xf32> -> vector<8x32xf32>
    %c0_7 = arith.constant 0 : index
    %c0_8 = arith.constant 0 : index
    %6 = vector.load %arg5[%c0_7, %c0_8] : memref<32x32xf32, #tpu.memory_space<vmem>>, vector<32x32xf32>
    %cst_9 = arith.constant dense<0.000000e+00> : vector<8x32xf32>
    %7 = tpu.matmul %3, %6, %cst_9 {dimension_numbers = #tpu.dot_dimension_numbers<[1], [0], [0], [1], [0, 0, 1, 1], [], []>} : vector<8x32xf32>, vector<32x32xf32>, vector<8x32xf32> -> vector<8x32xf32>
    %c0_10 = arith.constant 0 : index
    %c0_11 = arith.constant 0 : index
    %8 = vector.load %arg6[%c0_10, %c0_11] : memref<32x32xf32, #tpu.memory_space<vmem>>, vector<32x32xf32>
    %cst_12 = arith.constant dense<0.000000e+00> : vector<8x32xf32>
    %9 = tpu.matmul %3, %8, %cst_12 {dimension_numbers = #tpu.dot_dimension_numbers<[1], [0], [0], [1], [0, 0, 1, 1], [], []>} : vector<8x32xf32>, vector<32x32xf32>, vector<8x32xf32> -> vector<8x32xf32>
    %c0_13 = arith.constant 0 : index
    %c0_14 = arith.constant 0 : index
    %c0_15 = arith.constant 0 : index
    %10 = vector.load %arg3[%c0_13, %c0_14, %c0_15] : memref<1x1x8xf32, #tpu.memory_space<vmem>>, vector<1x1x8xf32>
    %11 = vector.shape_cast %10 : vector<1x1x8xf32> to vector<1x8xf32>
    %cst_16 = arith.constant 5.000000e-01 : f32
    %12 = vector.broadcast %cst_16 : f32 to vector<1x8xf32>
    %13 = arith.cmpf ogt, %11, %12 : vector<1x8xf32>
    %14 = vector.shape_cast %13 : vector<1x8xi1> to vector<1x8xi1>
    %15 = vector.broadcast %14 : vector<1x8xi1> to vector<8x8xi1>
    %16 = tpu.iota {dimensions = array<i32: 0>} : vector<8x8xi32>
    %17 = tpu.iota {dimensions = array<i32: 1>} : vector<8x8xi32>
    %18 = arith.cmpi sgt, %17, %16 : vector<8x8xi32>
    %19 = arith.ori %15, %18 : vector<8x8xi1>
    %cst_17 = arith.constant 0.000000e+00 : f32
    %20 = vector.broadcast %cst_17 : f32 to vector<8x32xf32>
    %21 = vector.extract_strided_slice %5 {offsets = [0, 0], sizes = [8, 8], strides = [1, 1]} : vector<8x32xf32> to vector<8x8xf32>
    %22 = vector.extract_strided_slice %7 {offsets = [0, 0], sizes = [8, 8], strides = [1, 1]} : vector<8x32xf32> to vector<8x8xf32>
    %23 = vector.extract_strided_slice %9 {offsets = [0, 0], sizes = [8, 8], strides = [1, 1]} : vector<8x32xf32> to vector<8x8xf32>
    %24 = tpu.transpose %22, [1, 0] : vector<8x8xf32> -> vector<8x8xf32>
    %cst_18 = arith.constant dense<0.000000e+00> : vector<8x8xf32>
    %25 = tpu.matmul %21, %24, %cst_18 {dimension_numbers = #tpu.dot_dimension_numbers<[1], [0], [0], [1], [0, 0, 1, 1], [], []>} : vector<8x8xf32>, vector<8x8xf32>, vector<8x8xf32> -> vector<8x8xf32>
    %cst_19 = arith.constant 0.353553385 : f32
    %26 = vector.broadcast %cst_19 : f32 to vector<8x8xf32>
    %27 = arith.mulf %25, %26 : vector<8x8xf32>
    %cst_20 = arith.constant -1.000000e+09 : f32
    %28 = vector.broadcast %cst_20 : f32 to vector<8x8xf32>
    %29 = arith.select %19, %28, %27 : vector<8x8xi1>, vector<8x8xf32>
    %cst_21 = arith.constant dense<0xFF800000> : vector<8xf32>
    %30 = vector.multi_reduction <maximumf>, %29, %cst_21 [1] : vector<8x8xf32> to vector<8xf32>
    %31 = vector.shape_cast %30 : vector<8xf32> to vector<8x1xf32>
    %32 = vector.broadcast %31 : vector<8x1xf32> to vector<8x8xf32>
    %33 = arith.subf %29, %32 : vector<8x8xf32>
    %34 = math.exp %33 : vector<8x8xf32>
    %cst_22 = arith.constant dense<0.000000e+00> : vector<8xf32>
    %35 = vector.multi_reduction <add>, %34, %cst_22 [1] : vector<8x8xf32> to vector<8xf32>
    %36 = vector.shape_cast %35 : vector<8xf32> to vector<8x1xf32>
    %37 = tpu.reciprocal %36 {approx = true} : vector<8x1xf32> -> vector<8x1xf32>
    %38 = vector.broadcast %37 : vector<8x1xf32> to vector<8x8xf32>
    %39 = arith.mulf %34, %38 : vector<8x8xf32>
    %c0_23 = arith.constant 0 : index
    %c0_24 = arith.constant 0 : index
    %c0_25 = arith.constant 0 : index
    %40 = vector.load %arg9[%c0_23, %c0_24, %c0_25] : memref<1x32x8xf32, #tpu.memory_space<vmem>>, vector<1x8x8xf32>
    %41 = vector.shape_cast %40 : vector<1x8x8xf32> to vector<8x8xf32>
    %42 = vector.shape_cast %39 : vector<8x8xf32> to vector<1x8x8xf32>
    tpu.vector_store %arg9[%c0_23, %c0_24, %c0_25], %42 {strides = array<i32>} : memref<1x32x8xf32, #tpu.memory_space<vmem>>, vector<1x8x8xf32>,
    %cst_26 = arith.constant dense<0.000000e+00> : vector<8x8xf32>
    %43 = tpu.matmul %39, %23, %cst_26 {dimension_numbers = #tpu.dot_dimension_numbers<[1], [0], [0], [1], [0, 0, 1, 1], [], []>} : vector<8x8xf32>, vector<8x8xf32>, vector<8x8xf32> -> vector<8x8xf32>
    %c0_27 = arith.constant 0 : index
    %c0_28 = arith.constant 0 : index
    %44 = vector.load %arg7[%c0_27, %c0_28] : memref<32x32xf32, #tpu.memory_space<vmem>>, vector<8x32xf32>
    %cst_29 = arith.constant dense<0.000000e+00> : vector<8x32xf32>
    %45 = tpu.matmul %43, %44, %cst_29 {dimension_numbers = #tpu.dot_dimension_numbers<[1], [0], [0], [1], [0, 0, 1, 1], [], []>} : vector<8x8xf32>, vector<8x32xf32>, vector<8x32xf32> -> vector<8x32xf32>
    %46 = arith.addf %20, %45 : vector<8x32xf32>
    %47 = vector.extract_strided_slice %5 {offsets = [0, 8], sizes = [8, 8], strides = [1, 1]} : vector<8x32xf32> to vector<8x8xf32>
    %48 = vector.extract_strided_slice %7 {offsets = [0, 8], sizes = [8, 8], strides = [1, 1]} : vector<8x32xf32> to vector<8x8xf32>
    %49 = vector.extract_strided_slice %9 {offsets = [0, 8], sizes = [8, 8], strides = [1, 1]} : vector<8x32xf32> to vector<8x8xf32>
    %50 = tpu.transpose %48, [1, 0] : vector<8x8xf32> -> vector<8x8xf32>
    %cst_30 = arith.constant dense<0.000000e+00> : vector<8x8xf32>
    %51 = tpu.matmul %47, %50, %cst_30 {dimension_numbers = #tpu.dot_dimension_numbers<[1], [0], [0], [1], [0, 0, 1, 1], [], []>} : vector<8x8xf32>, vector<8x8xf32>, vector<8x8xf32> -> vector<8x8xf32>
    %cst_31 = arith.constant 0.353553385 : f32
    %52 = vector.broadcast %cst_31 : f32 to vector<8x8xf32>
    %53 = arith.mulf %51, %52 : vector<8x8xf32>
    %cst_32 = arith.constant -1.000000e+09 : f32
    %54 = vector.broadcast %cst_32 : f32 to vector<8x8xf32>
    %55 = arith.select %19, %54, %53 : vector<8x8xi1>, vector<8x8xf32>
    %cst_33 = arith.constant dense<0xFF800000> : vector<8xf32>
    %56 = vector.multi_reduction <maximumf>, %55, %cst_33 [1] : vector<8x8xf32> to vector<8xf32>
    %57 = vector.shape_cast %56 : vector<8xf32> to vector<8x1xf32>
    %58 = vector.broadcast %57 : vector<8x1xf32> to vector<8x8xf32>
    %59 = arith.subf %55, %58 : vector<8x8xf32>
    %60 = math.exp %59 : vector<8x8xf32>
    %cst_34 = arith.constant dense<0.000000e+00> : vector<8xf32>
    %61 = vector.multi_reduction <add>, %60, %cst_34 [1] : vector<8x8xf32> to vector<8xf32>
    %62 = vector.shape_cast %61 : vector<8xf32> to vector<8x1xf32>
    %63 = tpu.reciprocal %62 {approx = true} : vector<8x1xf32> -> vector<8x1xf32>
    %64 = vector.broadcast %63 : vector<8x1xf32> to vector<8x8xf32>
    %65 = arith.mulf %60, %64 : vector<8x8xf32>
    %c0_35 = arith.constant 0 : index
    %c8 = arith.constant 8 : index
    %c0_36 = arith.constant 0 : index
    %66 = vector.load %arg9[%c0_35, %c8, %c0_36] : memref<1x32x8xf32, #tpu.memory_space<vmem>>, vector<1x8x8xf32>
    %67 = vector.shape_cast %66 : vector<1x8x8xf32> to vector<8x8xf32>
    %68 = vector.shape_cast %65 : vector<8x8xf32> to vector<1x8x8xf32>
    tpu.vector_store %arg9[%c0_35, %c8, %c0_36], %68 {strides = array<i32>} : memref<1x32x8xf32, #tpu.memory_space<vmem>>, vector<1x8x8xf32>,
    %cst_37 = arith.constant dense<0.000000e+00> : vector<8x8xf32>
    %69 = tpu.matmul %65, %49, %cst_37 {dimension_numbers = #tpu.dot_dimension_numbers<[1], [0], [0], [1], [0, 0, 1, 1], [], []>} : vector<8x8xf32>, vector<8x8xf32>, vector<8x8xf32> -> vector<8x8xf32>
    %c8_38 = arith.constant 8 : index
    %c0_39 = arith.constant 0 : index
    %70 = vector.load %arg7[%c8_38, %c0_39] : memref<32x32xf32, #tpu.memory_space<vmem>>, vector<8x32xf32>
    %cst_40 = arith.constant dense<0.000000e+00> : vector<8x32xf32>
    %71 = tpu.matmul %69, %70, %cst_40 {dimension_numbers = #tpu.dot_dimension_numbers<[1], [0], [0], [1], [0, 0, 1, 1], [], []>} : vector<8x8xf32>, vector<8x32xf32>, vector<8x32xf32> -> vector<8x32xf32>
    %72 = arith.addf %46, %71 : vector<8x32xf32>
    %73 = vector.extract_strided_slice %5 {offsets = [0, 16], sizes = [8, 8], strides = [1, 1]} : vector<8x32xf32> to vector<8x8xf32>
    %74 = vector.extract_strided_slice %7 {offsets = [0, 16], sizes = [8, 8], strides = [1, 1]} : vector<8x32xf32> to vector<8x8xf32>
    %75 = vector.extract_strided_slice %9 {offsets = [0, 16], sizes = [8, 8], strides = [1, 1]} : vector<8x32xf32> to vector<8x8xf32>
    %76 = tpu.transpose %74, [1, 0] : vector<8x8xf32> -> vector<8x8xf32>
    %cst_41 = arith.constant dense<0.000000e+00> : vector<8x8xf32>
    %77 = tpu.matmul %73, %76, %cst_41 {dimension_numbers = #tpu.dot_dimension_numbers<[1], [0], [0], [1], [0, 0, 1, 1], [], []>} : vector<8x8xf32>, vector<8x8xf32>, vector<8x8xf32> -> vector<8x8xf32>
    %cst_42 = arith.constant 0.353553385 : f32
    %78 = vector.broadcast %cst_42 : f32 to vector<8x8xf32>
    %79 = arith.mulf %77, %78 : vector<8x8xf32>
    %cst_43 = arith.constant -1.000000e+09 : f32
    %80 = vector.broadcast %cst_43 : f32 to vector<8x8xf32>
    %81 = arith.select %19, %80, %79 : vector<8x8xi1>, vector<8x8xf32>
    %cst_44 = arith.constant dense<0xFF800000> : vector<8xf32>
    %82 = vector.multi_reduction <maximumf>, %81, %cst_44 [1] : vector<8x8xf32> to vector<8xf32>
    %83 = vector.shape_cast %82 : vector<8xf32> to vector<8x1xf32>
    %84 = vector.broadcast %83 : vector<8x1xf32> to vector<8x8xf32>
    %85 = arith.subf %81, %84 : vector<8x8xf32>
    %86 = math.exp %85 : vector<8x8xf32>
    %cst_45 = arith.constant dense<0.000000e+00> : vector<8xf32>
    %87 = vector.multi_reduction <add>, %86, %cst_45 [1] : vector<8x8xf32> to vector<8xf32>
    %88 = vector.shape_cast %87 : vector<8xf32> to vector<8x1xf32>
    %89 = tpu.reciprocal %88 {approx = true} : vector<8x1xf32> -> vector<8x1xf32>
    %90 = vector.broadcast %89 : vector<8x1xf32> to vector<8x8xf32>
    %91 = arith.mulf %86, %90 : vector<8x8xf32>
    %c0_46 = arith.constant 0 : index
    %c16 = arith.constant 16 : index
    %c0_47 = arith.constant 0 : index
    %92 = vector.load %arg9[%c0_46, %c16, %c0_47] : memref<1x32x8xf32, #tpu.memory_space<vmem>>, vector<1x8x8xf32>
    %93 = vector.shape_cast %92 : vector<1x8x8xf32> to vector<8x8xf32>
    %94 = vector.shape_cast %91 : vector<8x8xf32> to vector<1x8x8xf32>
    tpu.vector_store %arg9[%c0_46, %c16, %c0_47], %94 {strides = array<i32>} : memref<1x32x8xf32, #tpu.memory_space<vmem>>, vector<1x8x8xf32>,
    %cst_48 = arith.constant dense<0.000000e+00> : vector<8x8xf32>
    %95 = tpu.matmul %91, %75, %cst_48 {dimension_numbers = #tpu.dot_dimension_numbers<[1], [0], [0], [1], [0, 0, 1, 1], [], []>} : vector<8x8xf32>, vector<8x8xf32>, vector<8x8xf32> -> vector<8x8xf32>
    %c16_49 = arith.constant 16 : index
    %c0_50 = arith.constant 0 : index
    %96 = vector.load %arg7[%c16_49, %c0_50] : memref<32x32xf32, #tpu.memory_space<vmem>>, vector<8x32xf32>
    %cst_51 = arith.constant dense<0.000000e+00> : vector<8x32xf32>
    %97 = tpu.matmul %95, %96, %cst_51 {dimension_numbers = #tpu.dot_dimension_numbers<[1], [0], [0], [1], [0, 0, 1, 1], [], []>} : vector<8x8xf32>, vector<8x32xf32>, vector<8x32xf32> -> vector<8x32xf32>
    %98 = arith.addf %72, %97 : vector<8x32xf32>
    %99 = vector.extract_strided_slice %5 {offsets = [0, 24], sizes = [8, 8], strides = [1, 1]} : vector<8x32xf32> to vector<8x8xf32>
    %100 = vector.extract_strided_slice %7 {offsets = [0, 24], sizes = [8, 8], strides = [1, 1]} : vector<8x32xf32> to vector<8x8xf32>
    %101 = vector.extract_strided_slice %9 {offsets = [0, 24], sizes = [8, 8], strides = [1, 1]} : vector<8x32xf32> to vector<8x8xf32>
    %102 = tpu.transpose %100, [1, 0] : vector<8x8xf32> -> vector<8x8xf32>
    %cst_52 = arith.constant dense<0.000000e+00> : vector<8x8xf32>
    %103 = tpu.matmul %99, %102, %cst_52 {dimension_numbers = #tpu.dot_dimension_numbers<[1], [0], [0], [1], [0, 0, 1, 1], [], []>} : vector<8x8xf32>, vector<8x8xf32>, vector<8x8xf32> -> vector<8x8xf32>
    %cst_53 = arith.constant 0.353553385 : f32
    %104 = vector.broadcast %cst_53 : f32 to vector<8x8xf32>
    %105 = arith.mulf %103, %104 : vector<8x8xf32>
    %cst_54 = arith.constant -1.000000e+09 : f32
    %106 = vector.broadcast %cst_54 : f32 to vector<8x8xf32>
    %107 = arith.select %19, %106, %105 : vector<8x8xi1>, vector<8x8xf32>
    %cst_55 = arith.constant dense<0xFF800000> : vector<8xf32>
    %108 = vector.multi_reduction <maximumf>, %107, %cst_55 [1] : vector<8x8xf32> to vector<8xf32>
    %109 = vector.shape_cast %108 : vector<8xf32> to vector<8x1xf32>
    %110 = vector.broadcast %109 : vector<8x1xf32> to vector<8x8xf32>
    %111 = arith.subf %107, %110 : vector<8x8xf32>
    %112 = math.exp %111 : vector<8x8xf32>
    %cst_56 = arith.constant dense<0.000000e+00> : vector<8xf32>
    %113 = vector.multi_reduction <add>, %112, %cst_56 [1] : vector<8x8xf32> to vector<8xf32>
    %114 = vector.shape_cast %113 : vector<8xf32> to vector<8x1xf32>
    %115 = tpu.reciprocal %114 {approx = true} : vector<8x1xf32> -> vector<8x1xf32>
    %116 = vector.broadcast %115 : vector<8x1xf32> to vector<8x8xf32>
    %117 = arith.mulf %112, %116 : vector<8x8xf32>
    %c0_57 = arith.constant 0 : index
    %c24 = arith.constant 24 : index
    %c0_58 = arith.constant 0 : index
    %118 = vector.load %arg9[%c0_57, %c24, %c0_58] : memref<1x32x8xf32, #tpu.memory_space<vmem>>, vector<1x8x8xf32>
    %119 = vector.shape_cast %118 : vector<1x8x8xf32> to vector<8x8xf32>
    %120 = vector.shape_cast %117 : vector<8x8xf32> to vector<1x8x8xf32>
    tpu.vector_store %arg9[%c0_57, %c24, %c0_58], %120 {strides = array<i32>} : memref<1x32x8xf32, #tpu.memory_space<vmem>>, vector<1x8x8xf32>,
    %cst_59 = arith.constant dense<0.000000e+00> : vector<8x8xf32>
    %121 = tpu.matmul %117, %101, %cst_59 {dimension_numbers = #tpu.dot_dimension_numbers<[1], [0], [0], [1], [0, 0, 1, 1], [], []>} : vector<8x8xf32>, vector<8x8xf32>, vector<8x8xf32> -> vector<8x8xf32>
    %c24_60 = arith.constant 24 : index
    %c0_61 = arith.constant 0 : index
    %122 = vector.load %arg7[%c24_60, %c0_61] : memref<32x32xf32, #tpu.memory_space<vmem>>, vector<8x32xf32>
    %cst_62 = arith.constant dense<0.000000e+00> : vector<8x32xf32>
    %123 = tpu.matmul %121, %122, %cst_62 {dimension_numbers = #tpu.dot_dimension_numbers<[1], [0], [0], [1], [0, 0, 1, 1], [], []>} : vector<8x8xf32>, vector<8x32xf32>, vector<8x32xf32> -> vector<8x32xf32>
    %124 = arith.addf %98, %123 : vector<8x32xf32>
    %125 = arith.addf %124, %1 : vector<8x32xf32>
    %cst_63 = arith.constant dense<0.000000e+00> : vector<8xf32>
    %126 = vector.multi_reduction <add>, %125, %cst_63 [1] : vector<8x32xf32> to vector<8xf32>
    %127 = vector.shape_cast %126 : vector<8xf32> to vector<8x1xf32>
    %cst_64 = arith.constant 3.200000e+01 : f32
    %128 = vector.broadcast %cst_64 : f32 to vector<8x1xf32>
    %129 = arith.divf %127, %128 : vector<8x1xf32>
    %130 = vector.broadcast %129 : vector<8x1xf32> to vector<8x32xf32>
    %131 = arith.subf %125, %130 : vector<8x32xf32>
    %132 = arith.mulf %131, %131 : vector<8x32xf32>
    %cst_65 = arith.constant dense<0.000000e+00> : vector<8xf32>
    %133 = vector.multi_reduction <add>, %132, %cst_65 [1] : vector<8x32xf32> to vector<8xf32>
    %134 = vector.shape_cast %133 : vector<8xf32> to vector<8x1xf32>
    %cst_66 = arith.constant 3.200000e+01 : f32
    %135 = vector.broadcast %cst_66 : f32 to vector<8x1xf32>
    %136 = arith.divf %134, %135 : vector<8x1xf32>
    %137 = vector.broadcast %129 : vector<8x1xf32> to vector<8x32xf32>
    %138 = arith.subf %125, %137 : vector<8x32xf32>
    %cst_67 = arith.constant 9.99999974E-6 : f32
    %139 = vector.broadcast %cst_67 : f32 to vector<8x1xf32>
    %140 = arith.addf %136, %139 : vector<8x1xf32>
    %141 = math.rsqrt %140 : vector<8x1xf32>
    %142 = vector.broadcast %141 : vector<8x1xf32> to vector<8x32xf32>
    %143 = arith.mulf %138, %142 : vector<8x32xf32>
    %c0_68 = arith.constant 0 : index
    %c0_69 = arith.constant 0 : index
    %c0_70 = arith.constant 0 : index
    %144 = vector.load %arg8[%c0_68, %c0_69, %c0_70] : memref<1x8x32xf32, #tpu.memory_space<vmem>>, vector<1x8x32xf32>
    %145 = vector.shape_cast %144 : vector<1x8x32xf32> to vector<8x32xf32>
    %146 = vector.shape_cast %143 : vector<8x32xf32> to vector<1x8x32xf32>
    tpu.vector_store %arg8[%c0_68, %c0_69, %c0_70], %146 {strides = array<i32>} : memref<1x8x32xf32, #tpu.memory_space<vmem>>, vector<1x8x32xf32>,
    return
  }
  func.func @transform_0(%arg0: i32) -> (i32, i32, i32) {
    %c0_i32 = arith.constant 0 : i32
    %c0_i32_0 = arith.constant 0 : i32
    %c0_i32_1 = arith.constant 0 : i32
    return %arg0, %c0_i32, %c0_i32_0 : i32, i32, i32
  }
  func.func @transform_1(%arg0: i32) -> (i32, i32, i32) {
    %c0_i32 = arith.constant 0 : i32
    %c0_i32_0 = arith.constant 0 : i32
    %c0_i32_1 = arith.constant 0 : i32
    return %arg0, %c0_i32, %c0_i32_0 : i32, i32, i32
  }
  func.func @transform_2(%arg0: i32) -> (i32, i32, i32) {
    %c0_i32 = arith.constant 0 : i32
    %c0_i32_0 = arith.constant 0 : i32
    %c0_i32_1 = arith.constant 0 : i32
    return %arg0, %c0_i32, %c0_i32_0 : i32, i32, i32
  }
  func.func @transform_3(%arg0: i32) -> (i32, i32) {
    %c0_i32 = arith.constant 0 : i32
    %c0_i32_0 = arith.constant 0 : i32
    %c0_i32_1 = arith.constant 0 : i32
    return %c0_i32, %c0_i32_0 : i32, i32
  }
  func.func @transform_4(%arg0: i32) -> (i32, i32) {
    %c0_i32 = arith.constant 0 : i32
    %c0_i32_0 = arith.constant 0 : i32
    %c0_i32_1 = arith.constant 0 : i32
    return %c0_i32, %c0_i32_0 : i32, i32
  }
  func.func @transform_5(%arg0: i32) -> (i32, i32) {
    %c0_i32 = arith.constant 0 : i32
    %c0_i32_0 = arith.constant 0 : i32
    %c0_i32_1 = arith.constant 0 : i32
    return %c0_i32, %c0_i32_0 : i32, i32
  }
  func.func @transform_6(%arg0: i32) -> (i32, i32) {
    %c0_i32 = arith.constant 0 : i32
    %c0_i32_0 = arith.constant 0 : i32
    %c0_i32_1 = arith.constant 0 : i32
    return %c0_i32, %c0_i32_0 : i32, i32
  }
  func.func @transform_7(%arg0: i32) -> (i32, i32, i32) {
    %c0_i32 = arith.constant 0 : i32
    %c0_i32_0 = arith.constant 0 : i32
    %c0_i32_1 = arith.constant 0 : i32
    return %arg0, %c0_i32, %c0_i32_0 : i32, i32, i32
  }
  func.func @transform_8(%arg0: i32) -> (i32, i32, i32) {
    %c0_i32 = arith.constant 0 : i32
    %c0_i32_0 = arith.constant 0 : i32
    %c0_i32_1 = arith.constant 0 : i32
    return %arg0, %c0_i32, %c0_i32_0 : i32, i32, i32
  }
}

module attributes {stable_mosaic.version = 11 : i64} {
  func.func @_proj_kernel(%arg0: memref<16x32xf32, #tpu.memory_space<vmem>>, %arg1: memref<32x16xf32, #tpu.memory_space<vmem>>, %arg2: memref<16x16xf32, #tpu.memory_space<vmem>>) attributes {dimension_semantics = [], scalar_prefetch = 0 : i64, scratch_operands = 0 : i64, tpu.core_type = #tpu.core_type<tc>} {
    %c0 = arith.constant 0 : index
    %c0_0 = arith.constant 0 : index
    %0 = vector.load %arg0[%c0, %c0_0] : memref<16x32xf32, #tpu.memory_space<vmem>>, vector<16x32xf32>
    %c0_1 = arith.constant 0 : index
    %c0_2 = arith.constant 0 : index
    %1 = vector.load %arg1[%c0_1, %c0_2] : memref<32x16xf32, #tpu.memory_space<vmem>>, vector<32x16xf32>
    %cst = arith.constant dense<0.000000e+00> : vector<16x16xf32>
    %2 = tpu.matmul %0, %1, %cst {dimension_numbers = #tpu.dot_dimension_numbers<[1], [0], [0], [1], [0, 0, 1, 1], [], []>} : vector<16x32xf32>, vector<32x16xf32>, vector<16x16xf32> -> vector<16x16xf32>
    %c0_3 = arith.constant 0 : index
    %c0_4 = arith.constant 0 : index
    %3 = vector.load %arg2[%c0_3, %c0_4] : memref<16x16xf32, #tpu.memory_space<vmem>>, vector<16x16xf32>
    tpu.vector_store %arg2[%c0_3, %c0_4], %2 {strides = array<i32>} : memref<16x16xf32, #tpu.memory_space<vmem>>, vector<16x16xf32>,
    return
  }
}

</mosaic_0001>

<bundles_post_ra>
// kernel: transformer_forward.21
= control target key start
LH: loop header
LB: loop body
LE: loop exit
PB: predicated region body
PF: predicated region fallthrough
CT: control target
= control target key end

     0   :  { %vm18_vm0 = vcmask 261120   ;;  %s221_s0 = inlined_call_operand.vmem [shape: f32[16,32], index: 0, kind: input, shape index: {}]   ;;  %s222_s1 = inlined_call_operand.vmem [shape: f32[32,16], index: 1, kind: input, shape index: {}]   ;;  %s223_s2 = inlined_call_operand.hbm [shape: f32[16,16], index: 2, kind: output, shape index: {}]  }
   0x1   :  { %v14_v0 = vld [vmem:[%s222_s1] sm:$0xff]  ;;  %v15_v1 = vld [vmem:[%s222_s1 + $0x8] sm:$0xff]  ;;  %v16_v2 = vld [vmem:[%s222_s1 + $0x10] sm:$0xff] }
   0x2   :  { %v138_v3 = vpack.c.bf16 %v15_v1, %v14_v0  ;;  %v17_v4 = vld [vmem:[%s222_s1 + $0x18] sm:$0xff]  ;;  %v12_v5 = vld [vmem:[%s221_s0] sm:$0xff] }
   0x3   :  { %v142_v6 = vpack.c.bf16 %v17_v4, %v16_v2  ;;  %135 = vmatprep.mubr.msk.f32.mxu0 %vm18_vm0, %v12_v5 }
   0x4   :  { %7 = vsyncpa [#allocation3], 0  ;;  %139 = vmatprep.subr.bf16.mxu0 %v138_v3  ;;  %v13_v7 = vld [vmem:[%s221_s0 + $0x8] sm:$0xff]  ;;  %s173_s21 = smov [#allocation2]   ;;  %vm100_vm1 = vcmask 130048  }
   0x5   :  { %141 = vmatpush3.bf16.msra.mxu0 %v138_v3  ;;  %s108_s22 = sshll.u32 %s173_s21, 4  ;;  %s109_s22 = int_to_ptr.vmem [resolvable:$true] %s108_s22 }
   0x6   :  { %143 = vmatprep.subr.bf16.mxu0 %v142_v6  ;;  %s149_s1 = scalar_lea.vmem %s109_s22, 256  ;;  %p154_p1 = scmp.lt.s32.totalorder %s109_s22, %s109_s22 }
   0x7   :  { %p150_p0 = scmp.ne.s32.totalorder %s109_s22, %s149_s1  ;;  %p155_p2 = scmp.lt.s32.totalorder %s149_s1, %s149_s1 }
   0x9   :  { %145 = vmatpush3.bf16.msra.mxu0 %v142_v6  ;;  %p156_p3 = por %p155_p2, %p154_p1 }
   0xb   :  { %p157_p4 = pnand %p156_p3, %p150_p0 }
   0xc   :  { %136 = vmatmul.mubr.msk.f32.vlgmr.msra.gmra.mrb[0].mxu0 %vm18_vm0, %v13_v7 }
  0xdf   :  { %v137_v8 = vpop.f32.mrb[0].mxu0 }
  0xe0   :  { %102 = vst.msk [vmem:[#allocation2 + $0x8] sm:$0xff] %vm100_vm1, %v137_v8  ;;  %v91_v9 = vpop.f32.mrb[1].mxu0 }
  0xe1   :  { %101 = vst.msk [vmem:[#allocation2] sm:$0xff] %vm100_vm1, %v91_v9 }
  0xe2   :  { %160 = shalt.err (!%p157_p4)
}
  0xe3   :  { %s161_s0 = scalar_lea.hbm %s223_s2, 256 }
  0xe4   :  { %p162_p5 = scmp.ne.s32.totalorder %s223_s2, %s161_s0  ;;  %p165_p6 = scmp.lt.u32.totalorder %s161_s0, %s223_s2 }
  0xe6   :  { %p167_p7 = pnand %p165_p6, %p162_p5 }
  0xe8   :  { %170 = shalt.err (!%p167_p7)
}
  0xe9   :  { %s174_s29 = smov 128   ;;  %s175_s30 = smov 8  }
  0xea   :  { %114 = dma.vmem_to_hbm [thread:$0]  %s109_s22, 256, %s223_s2, [#allocation3], %s174_s29, %s174_s29, %s175_s30  }
  0xeb   :  { %171 = dma.done.wait [#allocation3], 256  }
  0xec   :  { %172 = vsyncadd [#allocation3], 4294967040 }
  0xed   :  { %118 = vsyncpa [#allocation3], 1 }

// kernel: transformer_forward.12
= control target key start
LH: loop header
LB: loop body
LE: loop exit
PB: predicated region body
PF: predicated region fallthrough
CT: control target
= control target key end

     0   :  { %s513_s12 = smov 0   ;;  %s577_s0 = inlined_call_operand.vmem [shape: f32[2,8,32], index: 0, kind: input, shape index: {}]   ;;  %s578_s1 = inlined_call_operand.vmem [shape: f32[32,64], index: 1, kind: input, shape index: {}]   ;;  %s579_s2 = inlined_call_operand.vmem [shape: f32[64,32], index: 2, kind: input, shape index: {}]   ;;  %s580_s3 = inlined_call_operand.vmem [shape: f32[2,8,32], index: 3, kind: output, shape index: {}]  }
   0x1 LB: > { %s396_s13 = sadd.s32 4294967295, %s488_s12   ;;  %p400_p0 = scmp.ge.s32.totalorder %s488_s12, 1  ;;  %s488_s12 = sphi %s513_s12, %s13_s12  }
   0x2   : > { %p136_p1 = scmp.lt.s32.totalorder %s488_s12, 3 }
   0x4   : > { %p137_p2 = pnand %p400_p0, %p136_p1 }
   0x5   : > { %v167_v0 = vld [vmem:[%s578_s1] sm:$0xff] (!%p137_p2)  ;;  %v168_v1 = vld [vmem:[%s578_s1 + $0x8] sm:$0xff] (!%p137_p2)  ;;  %v169_v2 = vld [vmem:[%s578_s1 + $0x10] sm:$0xff] (!%p137_p2)  ;;  %v490_v3 = vmov (!%p137_p2), 0.0|0.0   ;;  %vm491_vm0 = vmmov (!%p137_p2), 0   ;;  %v492_v6 = vmov (!%p137_p2), 0.0  }
   0x6   : > { %140 = sbr.rel (%p137_p2) target bundleno = 755 (0x2f3), region = 32  ;;  %451 = vmatprep.subr.bf16.mxu0 (!%p137_p2), %v490_v3  ;;  %v452_v4 = vpack.c.bf16 (!%p137_p2), %v168_v1, %v167_v0  ;;  %v170_v5 = vld [vmem:[%s578_s1 + $0x18] sm:$0xff] (!%p137_p2)  ;;  %429 = vmatprep.mubr.msk.f32.mxu0 (!%p137_p2), %vm491_vm0, %v492_v6  ;;  %p158_p3 = scmp.lt.s32.totalorder (!%p137_p2), %s396_s13, 1  ;;  %v246_v7 = vld [vmem:[%s579_s2] sm:$0xff] (!%p137_p2)  ;;  %v247_v8 = vld [vmem:[%s579_s2 + $0x8] sm:$0xff] (!%p137_p2)  ;;  %vm171_vm1 = vcmask (!%p137_p2), 261120  }
   0x7   : > { %457 = vmatprep.subr.bf16.mxu1 (!%p137_p2), %v490_v3  ;;  %v458_v9 = vpack.c.bf16 (!%p137_p2), %v247_v8, %v246_v7  ;;  %v248_v10 = vld [vmem:[%s579_s2 + $0x10] sm:$0xff] (!%p137_p2)  ;;  %v249_v11 = vld [vmem:[%s579_s2 + $0x18] sm:$0xff] (!%p137_p2)  ;;  %448 = vmatprep.mubr.msk.f32.mxu1 (!%p137_p2), %vm491_vm0, %v492_v6  ;;  %v455_v12 = vpack.c.bf16 (!%p137_p2), %v170_v5, %v169_v2  ;;  %v250_v14 = vld [vmem:[%s579_s2 + $0x20] sm:$0xff] (!%p137_p2)  ;;  %vm254_vm2 = vcmask (!%p137_p2), 523264  }
   0x8   : > { %453 = vmatpush3.bf16.msra.mxu0 (!%p137_p2), %v452_v4  ;;  %v461_v13 = vpack.c.bf16 (!%p137_p2), %v249_v11, %v248_v10  ;;  %v251_v15 = vld [vmem:[%s579_s2 + $0x28] sm:$0xff] (!%p137_p2)  ;;  %v252_v18 = vld [vmem:[%s579_s2 + $0x30] sm:$0xff] (!%p137_p2)  ;;  %v253_v19 = vld [vmem:[%s579_s2 + $0x38] sm:$0xff] (!%p137_p2) }
   0x9   : > { %454 = vmatprep.subr.bf16.mxu0 (!%p137_p2), %v490_v3  ;;  %459 = vmatpush3.bf16.msra.mxu1 (!%p137_p2), %v458_v9  ;;  %v464_v17 = vpack.c.bf16 (!%p137_p2), %v251_v15, %v250_v14  ;;  %v467_v20 = vpack.c.bf16 (!%p137_p2), %v253_v19, %v252_v18 }
   0xa   : > { %460 = vmatprep.subr.bf16.mxu1 (!%p137_p2), %v490_v3 }
   0xc   : > { %456 = vmatpush3.bf16.msra.mxu0 (!%p137_p2), %v455_v12 }
   0xd   : > { %s582_s13 = smov (!%p158_p3, %s396_s13), 1  ;;  %462 = vmatpush3.bf16.msra.mxu1 %v461_v13 }
   0xe   : > { %s401_s30 = sshll.u32 %s582_s13, 3  ;;  %463 = vmatprep.subr.bf16.mxu1 %v490_v3 }
   0xf   : > { %s161_s10 = scalar_lea.vmem %s577_s0, %s401_s30  ;;  %s165_s19 = scalar_lea.vmem %s580_s3, %s401_s30 }
  0x10   : > { %v166_v16 = vld [vmem:[%s161_s10] sm:$0xff] }
  0x11   : > { %430 = vmatmul.mubr.msk.f32.vlgmr.msra.gmra.mrb[0].mxu0 %vm171_vm1, %v166_v16  ;;  %465 = vmatpush3.bf16.msra.mxu1 %v464_v17 }
  0x12   : > { %466 = vmatprep.subr.bf16.mxu1 %v490_v3 }
  0x15   : > { %468 = vmatpush3.bf16.msra.mxu1 %v467_v20 }
  0xe4   : > { %v241_v21 = vpop.f32.mrb[0].mxu0 }
  0xe5   : > { %v245_v22 = vmax.f32 %v241_v21, 0.0  ;;  %v431_v23 = vpop.f32.mrb[1].mxu0 }
  0xe7   : > { %449 = vmatmul.mubr.msk.f32.vlgmr.msra.gmra.mrb[0].mxu1 %vm254_vm2, %v245_v22 }
 0x1ba   : > { %v324_v24 = vpop.f32.mrb[0].mxu1 }
 0x1bb   : > { %v325_v25 = vadd.f32 %v324_v24, %v166_v16  ;;  %v450_v26 = vpop.f32.mrb[1].mxu1 }
 0x1bd   : > { %v328_v27 = vsel %vm171_vm1, %v325_v25, 0.0 }
 0x1be   : > { %329 = vadd.xlane.f32.xlu0 %v328_v27 }
 0x24b   : > { %v330_v28 = vpop.xlane.xlu0 %329 }
 0x24c   : > { %v332_v29 = vmul.f32 0.03125, %v330_v28 }
 0x24e   : > { %v333_v30 = vsub.f32 %v325_v25, %v332_v29 }
 0x250   : > { %v334_v31 = vmul.f32 %v333_v30, %v333_v30 }
 0x252   : > { %v335_v32 = vsel %vm171_vm1, %v334_v31, 0.0 }
 0x253   : > { %336 = vadd.xlane.f32.xlu0 %v335_v32 }
 0x2e0   : > { %v337_v33 = vpop.xlane.xlu0 %336 }
 0x2e1   : > { %v338_v34 = vmul.f32 0.03125, %v337_v33 }
 0x2e3   : > { %v339_v35 = vadd.f32 1e-05, %v338_v34 }
 0x2e5   : > { %480 = vrsqrt.f32 %v339_v35 }
 0x2ef   : > { %v481_v36 = vpop.eup %480 }
 0x2f0   : > { %v341_v37 = vmul.f32 %v481_v36, %v333_v30 }
 0x2f2   : > { %342 = vst.msk [vmem:[%s165_s19] sm:$0xff] %vm171_vm1, %v341_v37 }
 0x2f3 PF: > { %s13_s12 = sadd.s32 1, %s488_s12  }
 0x2f4   : > { %p10_p4 = scmp.ge.s32.totalorder %s13_s12, 4  }
 0x2f6   :  { %12 = sbr.rel (!%p10_p4) target bundleno = 1 (0x1), region = 62 }

// kernel: transformer_forward.15
= control target key start
LH: loop header
LB: loop body
LE: loop exit
PB: predicated region body
PF: predicated region fallthrough
CT: control target
= control target key end

     0   :  { %14 = vsyncpa [#allocation3], 0  ;;  %s2363_s0 = inlined_call_operand.vmem [shape: f32[2,8,32], index: 0, kind: input, shape index: {}, may-alias: {0,1}]   ;;  %s2364_s1 = inlined_call_operand.vmem [shape: f32[2,8,32], index: 1, kind: input, shape index: {}, may-alias: {0,1}]   ;;  %s2365_s2 = inlined_call_operand.vmem [shape: f32[2,1,8], index: 2, kind: input, shape index: {}]   ;;  %s2366_s3 = inlined_call_operand.vmem [shape: f32[32,32], index: 3, kind: input, shape index: {}]   ;;  %s2367_s4 = inlined_call_operand.vmem [shape: f32[32,32], index: 4, kind: input, shape index: {}]   ;;  %s2368_s5 = inlined_call_operand.vmem [shape: f32[32,32], index: 5, kind: input, shape index: {}]   ;;  %s2369_s6 = inlined_call_operand.vmem [shape: f32[32,32], index: 6, kind: input, shape index: {}]   ;;  %s2370_s7 = inlined_call_operand.vmem [shape: f32[2,8,32], index: 7, kind: output, shape index: {0}]   ;;  %s2371_s8 = inlined_call_operand.hbm [shape: f32[2,32,8], index: 8, kind: output, shape index: {1}]  }
   0x1   :  { %16 = vsyncpa [#allocation3 + $0x1], 0  ;;  %s2067_s27 = smov 0   ;;  %s2069_s28 = smov 0  }
   0x2   :  { %s2071_s29 = smov 0   ;;  %s2073_s30 = smov 0  }
   0x3 LB: > { %s2088_s9 = sadd.s32 4294967295, %s2010_s30   ;;  %s1699_s10 = sadd.s32 4294967294, %s2010_s30   ;;  %s2010_s30 = sphi %s2073_s30, %s2379_s30   ;;  %s2006_s29 = sphi %s2071_s29, %s2378_s29   ;;  %s2002_s28 = sphi %s2069_s28, %s2377_s28   ;;  %s1998_s27 = sphi %s2067_s27, %s2376_s27  }
   0x4   : > { %s2092_s11 = sadd.s32 1, %s2010_s30   ;;  %s217_s12 = sadd.s32 1, %s2006_s29 }
   0x5   : > { %s214_s13 = ssub.s32 %s2010_s30, %s2092_s11  ;;  %p227_p0 = scmp.ne.s32.totalorder %s2006_s29, %s2002_s28 }
   0x6   : > { %p215_p1 = scmp.eq.s32.totalorder %s214_s13, 0  ;;  %p228_p2 = scmp.eq.s32.totalorder %s2088_s9, 1 }
   0x7   : > { %p233_p3 = scmp.ne.s32.totalorder %s2002_s28, %s1998_s27  ;;  %p234_p4 = scmp.eq.s32.totalorder %s1699_s10, 1 }
   0x8   : > { %s2103_s14 = scalar_select %p215_p1, %s2006_s29, %s217_s12  }
   0x9   : > { %p2105_p5 = por %p228_p2, %p227_p0  ;;  %p2109_p6 = por %p234_p4, %p233_p3 }
   0xa   : > { %p1702_p7 = scmp.ge.s32.totalorder %s2010_s30, 1  ;;  %p284_p8 = scmp.lt.s32.totalorder %s2010_s30, 3 }
   0xc   : > { %p285_p9 = pnand %p1702_p7, %p284_p8 }
   0xd   : > { %v423_v0 = vld [vmem:[%s2367_s4] sm:$0xff] (!%p285_p9)  ;;  %v424_v1 = vld [vmem:[%s2367_s4 + $0x8] sm:$0xff] (!%p285_p9)  ;;  %v2012_v3 = vmov (!%p285_p9), 0.0|0.0   ;;  %v425_v6 = vld [vmem:[%s2367_s4 + $0x10] sm:$0xff] (!%p285_p9)  ;;  %p328_p10 = scmp.lt.s32.totalorder (!%p285_p9), %s2088_s9, 1  ;;  %vm2013_vm0 = vmmov (!%p285_p9), 0   ;;  %v577_v30 = vlaneseq (!%p285_p9) }
   0xe   : > { %288 = sbr.rel (%p285_p9) target bundleno = 2902 (0xb56), region = 48  ;;  %v345_v2 = vld [vmem:[%s2366_s3] sm:$0xff] (!%p285_p9)  ;;  %1870 = vmatprep.subr.bf16.mxu1 (!%p285_p9), %v2012_v3  ;;  %v1871_v4 = vpack.c.bf16 (!%p285_p9), %v424_v1, %v423_v0  ;;  %1864 = vmatprep.subr.bf16.mxu0 (!%p285_p9), %v2012_v3  ;;  %v346_v5 = vld [vmem:[%s2366_s3 + $0x8] sm:$0xff] (!%p285_p9)  ;;  %v426_v7 = vld [vmem:[%s2367_s4 + $0x18] sm:$0xff] (!%p285_p9)  ;;  %v2014_v9 = vmov (!%p285_p9), 0.0   ;;  %vm349_vm1 = vcmask (!%p285_p9), 261120  }
   0xf   : > { %v1865_v8 = vpack.c.bf16 (!%p285_p9), %v346_v5, %v345_v2  ;;  %1790 = vmatprep.mubr.msk.f32.mxu1 (!%p285_p9), %vm2013_vm0, %v2014_v9  ;;  %v347_v10 = vld [vmem:[%s2366_s3 + $0x10] sm:$0xff] (!%p285_p9)  ;;  %v348_v11 = vld [vmem:[%s2366_s3 + $0x18] sm:$0xff] (!%p285_p9)  ;;  %1779 = vmatprep.mubr.msk.f32.mxu0 (!%p285_p9), %vm2013_vm0, %v2014_v9  ;;  %v1874_v12 = vpack.c.bf16 (!%p285_p9), %v426_v7, %v425_v6  ;;  %v500_v16 = vld [vmem:[%s2368_s5] sm:$0xff] (!%p285_p9)  ;;  %vm588_vm2 = vcmask (!%p285_p9), 64512   ;;  %s2015_s25 = smov (!%p285_p9), 120   ;;  %v578_v32 = vshrl.u32 (!%p285_p9), %v577_v30, 7 }
  0x10   : > { %1872 = vmatpush3.bf16.msra.mxu1 (!%p285_p9), %v1871_v4  ;;  %v1868_v13 = vpack.c.bf16 (!%p285_p9), %v348_v11, %v347_v10  ;;  %v501_v17 = vld [vmem:[%s2368_s5 + $0x8] sm:$0xff] (!%p285_p9)  ;;  %v502_v18 = vld [vmem:[%s2368_s5 + $0x10] sm:$0xff] (!%p285_p9)  ;;  %v503_v20 = vld [vmem:[%s2368_s5 + $0x18] sm:$0xff] (!%p285_p9)  ;;  %v2016_v34 = vmov (!%p285_p9), 0   ;;  %v585_v37 = vand.u32 (!%p285_p9), 127, %v577_v30  ;;  %s2018_s13 = smov (!%p285_p9), 104  }
  0x11   : > { %1866 = vmatpush3.bf16.msra.mxu0 (!%p285_p9), %v1865_v8  ;;  %1873 = vmatprep.subr.bf16.mxu1 (!%p285_p9), %v2012_v3  ;;  %v1877_v19 = vpack.c.bf16 (!%p285_p9), %v501_v17, %v500_v16  ;;  %v1880_v21 = vpack.c.bf16 (!%p285_p9), %v503_v20, %v502_v18  ;;  %v579_v33 = vsub.s32 (!%p285_p9), 0, %v578_v32  ;;  %s325_s17 = sand.u32 (!%p285_p9), 1, %s2002_s28   ;;  %v922_v62 = vld [vmem:[%s2369_s6 + $0x8] sm:$0xff] (!%p285_p9) }
  0x12   : > { %1867 = vmatprep.subr.bf16.mxu0 (!%p285_p9), %v2012_v3  ;;  %vm586_vm5 = vcmp.gt.s32.totalorder (!%p285_p9), %v585_v37, %v578_v32  ;;  %s1703_s18 = sshll.u32 (!%p285_p9), %s325_s17, 5 }
  0x13   : > { %s2234_s19 = scalar_lea.vmem (!%p285_p9), [#allocation2], %s1703_s18 }
  0x14   : > { %1875 = vmatpush3.bf16.msra.mxu1 (!%p285_p9), %v1874_v12  ;;  %s1592_s18 = sshll.u32 (!%p285_p9), %s2234_s19, 4  ;;  %s2313_s18 = int_to_ptr.vmem [resolvable:$true] %s1592_s18 }
  0x15   : > { %s2145_s20 = scalar_select %p328_p10, %s2088_s9, 1  ;;  %1869 = vmatpush3.bf16.msra.mxu0 %v1868_v13  ;;  %1804 = vmatprep.subr.mxu1 %v2014_v9 }
  0x16   : > { %1876 = vmatprep.subr.bf16.mxu0 %v2012_v3  ;;  %s1948_s26 = scalar_lea.vmem %s2313_s18, 512 }
  0x17   : > { %s2148_s21 = sshll.u32 %s2145_s20, 3  ;;  %s338_s12 = scalar_lea.vmem %s2365_s2, %s2145_s20 }
  0x18   : > { %s335_s24 = scalar_lea.vmem %s2364_s1, %s2148_s21  ;;  %s331_s10 = scalar_lea.vmem %s2363_s0, %s2148_s21  ;;  %v574_v31 = vld [vmem:[%s338_s12] sm:$0x1] }
  0x19   : > { %v344_v14 = vld [vmem:[%s335_s24] sm:$0xff]  ;;  %vm575_vm3 = vcmp.gt.f32.partialorder %v574_v31, 0.5  ;;  %s2017_s20 = smov 112   ;;  %p1949_p11 = scmp.ne.s32.totalorder %s2313_s18, %s1948_s26 }
  0x1a   : > { %v2158_v15 = vld [vmem:[%s331_s10] sm:$0xff]  ;;  %1791 = vmatmul.mubr.msk.f32.vlgmr.msra.gmra.mrb[0].mxu1 %vm349_vm1, %v344_v14  ;;  %v576_v35 = vsel %vm575_vm3, 1, %v2016_v34 }
  0x1b   : > { %1780 = vmatmul.mubr.msk.f32.vlgmr.msra.gmra.mrb[0].mxu0 %vm349_vm1, %v2158_v15  ;;  %1806 = vmatprep.mubr.msk.f32.mxu1 %vm2013_vm0, %v2014_v9  ;;  %v580_v36 = vrot.slane %v576_v35, %v579_v33  ;;  %p1950_p12 = pnand %p1949_p11, %p2105_p5 }
  0x1c   : > { %1801 = vmatprep.mubr.msk.f32.mxu0 %vm2013_vm0, %v2014_v9  ;;  %1878 = vmatpush3.bf16.msra.mxu0 %v1877_v19 }
  0x1d   : > { %1879 = vmatprep.subr.bf16.mxu0 %v2012_v3  ;;  %vm581_vm4 = vcmp.eq.s32.totalorder %v580_v36, 1  ;;  %v752_v3 = vld [vmem:[%s2369_s6] sm:$0xff]  ;;  %p1951_p13 = pneg %p1950_p12 }
  0x1e   : > { %vm2212_vm6 = vmor %vm581_vm4, %vm586_vm5 }
  0x20   : > { %1881 = vmatpush3.bf16.msra.mxu0 %v1880_v21 }
  0x21   : > { %1814 = vmatprep.subr.mxu0 %v2014_v9 }
  0x23   : > { %1802 = vmatmul.mubr.msk.f32.vlgmr.msra.gmra.mrb[2].mxu0 %vm349_vm1, %v344_v14 }
  0x24   : > { %1816 = vmatprep.mubr.msk.f32.mxu0 %vm2013_vm0, %v2014_v9 }
  0xed   : > { %v2184_v22 = vpop.f32.mrb[0].mxu1 }
  0xee   : > { %755 = vrot.lane.b32.xlu0 %v2184_v22, %s2015_s25  ;;  %v1792_v23 = vpop.f32.mrb[1].mxu1  ;;  %1805 = vmatpush3.xpose.msk.msra.mxu1 %vm588_vm2, %v2184_v22  ;;  %v2190_v24 = vpop.f32.mrb[0].mxu0 }
  0xef   : > { %v1781_v25 = vpop.f32.mrb[1].mxu0  ;;  %1809 = vmatprep.subr.mxu1 %v2014_v9 }
  0xf1   : > { %1807 = vmatmul.mubr.msk.f32.vlgmr.msra.gmra.mrb[2].mxu1 %vm588_vm2, %v2190_v24 }
  0xf2   : > { %753 = vrot.lane.b32.xlu0 %v2190_v24, %s2015_s25  ;;  %1811 = vmatprep.mubr.msk.f32.mxu1 %vm2013_vm0, %v2014_v9 }
  0xf6   : > { %v2199_v26 = vpop.f32.mrb[2].mxu0 }
  0xf7   : > { %v1803_v27 = vpop.f32.mrb[3].mxu0  ;;  %1810 = vmatpush3.msra.mxu1 %v2199_v26 }
  0xf8   : > { %1819 = vmatprep.subr.mxu1 %v2014_v9 }
 0x160   : > { %v756_v28 = vpop.permute.xlu0 %755 }
 0x161   : > { %1815 = vmatpush3.xpose.msk.msra.mxu0 %vm588_vm2, %v756_v28 }
 0x162   : > { %1824 = vmatprep.subr.mxu0 %v2014_v9 }
 0x164   : > { %v754_v29 = vpop.permute.xlu0 %753 }
 0x165   : > { %1817 = vmatmul.mubr.msk.f32.vlgmr.msra.gmra.mrb[4].mxu0 %vm588_vm2, %v754_v29 }
 0x166   : > { %1826 = vmatprep.mubr.msk.f32.mxu0 %vm2013_vm0, %v2014_v9  ;;  %1825 = vmatpush3.msra.mxu0 %v922_v62 }
 0x167   : > { %1834 = vmatprep.subr.mxu0 %v2014_v9 }
 0x1c4   : > { %v661_v38 = vpop.f32.mrb[2].mxu1 }
 0x1c5   : > { %v665_v40 = vmul.f32 0.35355338, %v661_v38  ;;  %v1808_v41 = vpop.f32.mrb[3].mxu1 }
 0x1c7   : > { %v666_v42 = vsel %vm2212_vm6, -1e+09, %v665_v40 }
 0x1c8   : > { %v667_v43 = vsel %vm588_vm2, %v666_v42, -inf }
 0x1c9   : > { %668 = vmax.xlane.f32.xlu1 %v667_v43 }
 0x238   : > { %v827_v44 = vpop.f32.mrb[4].mxu0 }
 0x239   : > { %v831_v45 = vmul.f32 0.35355338, %v827_v44  ;;  %v1818_v46 = vpop.f32.mrb[5].mxu0 }
 0x23b   : > { %v832_v47 = vsel %vm2212_vm6, -1e+09, %v831_v45 }
 0x23c   : > { %v833_v48 = vsel %vm588_vm2, %v832_v47, -inf }
 0x23d   : > { %834 = vmax.xlane.f32.xlu1 %v833_v48 }
 0x256   : > { %v669_v49 = vpop.xlane.xlu1 %668 }
 0x257   : > { %v670_v50 = vsub.f32 %v666_v42, %v669_v49 }
 0x259   : > { %v671_v51 = vmul.f32 1.442695, %v670_v50 }
 0x25b   : > { %1930 = vpow2.f32 %v671_v51 }
 0x265   : > { %v1931_v52 = vpop.eup %1930 }
 0x266   : > { %v673_v53 = vsel %vm588_vm2, %v1931_v52, 0.0 }
 0x267   : > { %674 = vadd.xlane.f32.xlu0 %v673_v53 }
 0x27d   : > { %1161 = vrot.lane.b32.xlu0 %v2199_v26, %s2017_s20 }
 0x281   : > { %1314 = vrot.lane.b32.xlu0 %v2184_v22, %s2018_s13 }
 0x2ca   : > { %v835_v54 = vpop.xlane.xlu1 %834 }
 0x2cb   : > { %v836_v55 = vsub.f32 %v832_v47, %v835_v54 }
 0x2cd   : > { %v837_v56 = vmul.f32 1.442695, %v836_v55 }
 0x2cf   : > { %1932 = vpow2.f32 %v837_v56 }
 0x2d9   : > { %v1933_v57 = vpop.eup %1932 }
 0x2da   : > { %v839_v58 = vsel %vm588_vm2, %v1933_v57, 0.0 }
 0x2db   : > { %840 = vadd.xlane.f32.xlu1 %v839_v58 }
 0x2ec   : > { %846 = vrot.lane.b32.xlu1 %v2199_v26, %s2015_s25  ;;  %s2317_s25 = scalar_lea.sflag [#allocation3], %s325_s17 }
 0x2f0   : > { %1071 = vrot.lane.b32.xlu1 %v2184_v22, %s2017_s20 }
 0x2f4   : > { %v675_v59 = vpop.xlane.xlu0 %674  ;;  %1069 = vrot.lane.b32.xlu1 %v2190_v24, %s2017_s20 }
 0x2f5   : > { %1934 = vrcp.f32 %v675_v59 }
 0x2f8   : > { %v1162_v5 = vpop.permute.xlu0 %1161 }
 0x2fc   : > { %v1315_v30 = vpop.permute.xlu0 %1314 }
 0x2ff   : > { %v1935_v60 = vpop.eup %1934 }
 0x300   : > { %v677_v61 = vmul.f32 %v1935_v60, %v1931_v52 }
 0x302   : > { %678 = vst.msk [vmem:[%s2234_s19] sm:$0xff] %vm588_vm2, %v677_v61  ;;  %1812 = vmatmul.mubr.msk.f32.vlgmr.msra.gmra.mrb[4].mxu1 %vm588_vm2, %v677_v61 }
 0x303   : > { %1821 = vmatprep.mubr.msk.f32.mxu1 %vm2013_vm0, %v2014_v9 }
 0x368   : > { %v841_v63 = vpop.xlane.xlu1 %840 }
 0x369   : > { %1936 = vrcp.f32 %v841_v63 }
 0x36c   : > { %v847_v0 = vpop.permute.xlu1 %846 }
 0x36d   : > { %1820 = vmatpush3.msra.mxu1 %v847_v0 }
 0x36e   : > { %1829 = vmatprep.subr.mxu1 %v2014_v9 }
 0x370   : > { %v1072_v7 = vpop.permute.xlu1 %1071 }
 0x373   : > { %v1937_v1 = vpop.eup %1936 }
 0x374   : > { %v843_v2 = vmul.f32 %v1937_v1, %v1933_v57  ;;  %v1070_v11 = vpop.permute.xlu1 %1069 }
 0x376   : > { %844 = vst.msk [vmem:[%s2234_s19 + $0x8] sm:$0xff] %vm588_vm2, %v843_v2  ;;  %1822 = vmatmul.mubr.msk.f32.vlgmr.msra.gmra.mrb[6].mxu1 %vm588_vm2, %v843_v2 }
 0x377   : > { %1830 = vmatpush3.msra.mxu1 %v752_v3  ;;  %1831 = vmatprep.mubr.msk.f32.mxu1 %vm2013_vm0, %v2014_v9 }
 0x378   : > { %1839 = vmatprep.subr.mxu1 %v2014_v9 }
 0x3d5   : > { %v748_v4 = vpop.f32.mrb[4].mxu1 }
 0x3d6   : > { %v1813_v6 = vpop.f32.mrb[5].mxu1  ;;  %1832 = vmatmul.mubr.msk.f32.vlgmr.msra.gmra.mrb[8].mxu1 %vm588_vm2, %v748_v4 }
 0x3d7   : > { %1840 = vmatpush3.msra.mxu1 %v1162_v5  ;;  %1841 = vmatprep.mubr.msk.f32.mxu1 %vm2013_vm0, %v2014_v9 }
 0x3d8   : > { %1849 = vmatprep.subr.mxu1 %v2014_v9 }
 0x449   : > { %v918_v8 = vpop.f32.mrb[6].mxu1 }
 0x44a   : > { %v1823_v10 = vpop.f32.mrb[7].mxu1  ;;  %1827 = vmatmul.mubr.msk.f32.vlgmr.msra.gmra.mrb[6].mxu0 %vm588_vm2, %v918_v8 }
 0x44b   : > { %1835 = vmatpush3.xpose.msk.msra.mxu0 %vm588_vm2, %v1072_v7  ;;  %1836 = vmatprep.mubr.msk.f32.mxu0 %vm2013_vm0, %v2014_v9 }
 0x44c   : > { %1844 = vmatprep.subr.mxu0 %v2014_v9 }
 0x44e   : > { %1837 = vmatmul.mubr.msk.f32.vlgmr.msra.gmra.mrb[8].mxu0 %vm588_vm2, %v1070_v11 }
 0x44f   : > { %1846 = vmatprep.mubr.msk.f32.mxu0 %vm2013_vm0, %v2014_v9 }
 0x4a9   : > { %v1065_v12 = vpop.f32.mrb[8].mxu1 }
 0x4aa   : > { %v1833_v13 = vpop.f32.mrb[9].mxu1 }
 0x51d   : > { %v992_v14 = vpop.f32.mrb[6].mxu0 }
 0x51e   : > { %v1066_v16 = vadd.f32 %v1065_v12, %v992_v14  ;;  %v1828_v17 = vpop.f32.mrb[7].mxu0 }
 0x521   : > { %v1143_v18 = vpop.f32.mrb[8].mxu0 }
 0x522   : > { %v1147_v19 = vmul.f32 0.35355338, %v1143_v18  ;;  %v1838_v20 = vpop.f32.mrb[9].mxu0 }
 0x524   : > { %v1148_v21 = vsel %vm2212_vm6, -1e+09, %v1147_v19 }
 0x525   : > { %v1149_v22 = vsel %vm588_vm2, %v1148_v21, -inf }
 0x526   : > { %1150 = vmax.xlane.f32.xlu1 %v1149_v22 }
 0x5b3   : > { %v1151_v23 = vpop.xlane.xlu1 %1150 }
 0x5b4   : > { %v1152_v25 = vsub.f32 %v1148_v21, %v1151_v23 }
 0x5b6   : > { %v1153_v27 = vmul.f32 1.442695, %v1152_v25 }
 0x5b8   : > { %1938 = vpow2.f32 %v1153_v27 }
 0x5c2   : > { %v1939_v28 = vpop.eup %1938 }
 0x5c3   : > { %v1155_v29 = vsel %vm588_vm2, %v1939_v28, 0.0 }
 0x5c4   : > { %1156 = vadd.xlane.f32.xlu0 %v1155_v29 }
 0x5da   : > { %1312 = vrot.lane.b32.xlu0 %v2190_v24, %s2018_s13  ;;  %v1237_v24 = vld [vmem:[%s2369_s6 + $0x10] sm:$0xff] }
 0x5db   : > { %1845 = vmatpush3.msra.mxu0 %v1237_v24 }
 0x5dc   : > { %1854 = vmatprep.subr.mxu0 %v2014_v9 }
 0x651   : > { %v1157_v31 = vpop.xlane.xlu0 %1156 }
 0x652   : > { %1940 = vrcp.f32 %v1157_v31 }
 0x655   : > { %v1313_v34 = vpop.permute.xlu0 %1312 }
 0x65c   : > { %v1941_v32 = vpop.eup %1940 }
 0x65d   : > { %v1159_v33 = vmul.f32 %v1941_v32, %v1939_v28 }
 0x65f   : > { %1160 = vst.msk [vmem:[%s2234_s19 + $0x10] sm:$0xff] %vm588_vm2, %v1159_v33  ;;  %1842 = vmatmul.mubr.msk.f32.vlgmr.msra.gmra.mrb[10].mxu1 %vm588_vm2, %v1159_v33 }
 0x660   : > { %1850 = vmatpush3.xpose.msk.msra.mxu1 %vm588_vm2, %v1315_v30  ;;  %1851 = vmatprep.mubr.msk.f32.mxu1 %vm2013_vm0, %v2014_v9 }
 0x661   : > { %1859 = vmatprep.subr.mxu1 %v2014_v9 }
 0x663   : > { %1852 = vmatmul.mubr.msk.f32.vlgmr.msra.gmra.mrb[12].mxu1 %vm588_vm2, %v1313_v34 }
 0x664   : > { %1861 = vmatprep.mubr.msk.f32.mxu1 %vm2013_vm0, %v2014_v9 }
 0x732   : > { %v1233_v35 = vpop.f32.mrb[10].mxu1 }
 0x733   : > { %v1843_v36 = vpop.f32.mrb[11].mxu1  ;;  %1847 = vmatmul.mubr.msk.f32.vlgmr.msra.gmra.mrb[10].mxu0 %vm588_vm2, %v1233_v35 }
 0x734   : > { %1856 = vmatprep.mubr.msk.f32.mxu0 %vm2013_vm0, %v2014_v9  ;;  %v1480_v9 = vld [vmem:[%s2369_s6 + $0x18] sm:$0xff] }
 0x735   : > { %1860 = vmatpush3.msra.mxu1 %v1480_v9 }
 0x736   : > { %v1386_v37 = vpop.f32.mrb[12].mxu1 }
 0x737   : > { %v1390_v38 = vmul.f32 0.35355338, %v1386_v37  ;;  %v1853_v40 = vpop.f32.mrb[13].mxu1 }
 0x739   : > { %v1391_v41 = vsel %vm2212_vm6, -1e+09, %v1390_v38 }
 0x73a   : > { %v1392_v42 = vsel %vm588_vm2, %v1391_v41, -inf }
 0x73b   : > { %1393 = vmax.xlane.f32.xlu0 %v1392_v42 }
 0x7c8   : > { %v1394_v43 = vpop.xlane.xlu0 %1393 }
 0x7c9   : > { %v1395_v44 = vsub.f32 %v1391_v41, %v1394_v43 }
 0x7cb   : > { %v1396_v45 = vmul.f32 1.442695, %v1395_v44 }
 0x7cd   : > { %1942 = vpow2.f32 %v1396_v45 }
 0x7d7   : > { %v1943_v46 = vpop.eup %1942 }
 0x7d8   : > { %v1398_v47 = vsel %vm588_vm2, %v1943_v46, 0.0 }
 0x7d9   : > { %1399 = vadd.xlane.f32.xlu1 %v1398_v47 }
 0x7ea   : > { %1404 = vrot.lane.b32.xlu1 %v2199_v26, %s2018_s13  ;;  %s1731_s13 = sshll.u32 %s2088_s9, 9  ;;  %s2019_s9 = smov [#allocation2]  }
 0x7eb   : > { %s2311_s24 = scalar_lea.hbm %s2371_s8, %s1731_s13 }
 0x806   : > { %v1307_v39 = vpop.f32.mrb[10].mxu0 }
 0x807   : > { %v1311_v48 = vadd.f32 %v1307_v39, %v1066_v16  ;;  %v1848_v49 = vpop.f32.mrb[11].mxu0 }
 0x866   : > { %v1400_v50 = vpop.xlane.xlu1 %1399 }
 0x867   : > { %1944 = vrcp.f32 %v1400_v50 }
 0x86a   : > { %v1405_v51 = vpop.permute.xlu1 %1404 }
 0x86b   : > { %1855 = vmatpush3.msra.mxu0 %v1405_v51 }
 0x871   : > { %v1945_v52 = vpop.eup %1944 }
 0x872   : > { %v1402_v53 = vmul.f32 %v1945_v52, %v1943_v46 }
 0x874   : > { %1403 = vst.msk [vmem:[%s2234_s19 + $0x18] sm:$0xff] %vm588_vm2, %v1402_v53  ;;  %1857 = vmatmul.mubr.msk.f32.vlgmr.msra.gmra.mrb[12].mxu0 %vm588_vm2, %v1402_v53  ;;  %s1952_s19 = sshll.u32 %s2019_s9, 4  ;;  %s1953_s19 = int_to_ptr.vmem [resolvable:$false] %s1952_s19 }
 0x875   : > { %s1954_s10 = scalar_lea.vmem %s1953_s19, 1024  ;;  %p1955_p0 = scmp.lt.s32.totalorder %s2313_s18, %s1953_s19 }
 0x876   : > { %p1956_p1 = scmp.lt.s32.totalorder %s1954_s10, %s1948_s26 }
 0x878   : > { %p1957_p2 = por %p1956_p1, %p1955_p0 }
 0x87a   : > { %p1958_p3 = pnand %p1957_p2, %p1951_p13 }
 0x947   : > { %v1476_v26 = vpop.f32.mrb[12].mxu0 }
 0x948   : > { %v1858_v54 = vpop.f32.mrb[13].mxu0  ;;  %1862 = vmatmul.mubr.msk.f32.vlgmr.msra.gmra.mrb[14].mxu1 %vm588_vm2, %v1476_v26 }
 0xa1b   : > { %v1550_v55 = vpop.f32.mrb[14].mxu1 }
 0xa1c   : > { %v1554_v56 = vadd.f32 %v1550_v55, %v1311_v48  ;;  %v1863_v57 = vpop.f32.mrb[15].mxu1 }
 0xa1e   : > { %v1555_v58 = vadd.f32 %v1554_v56, %v2158_v15 }
 0xa20   : > { %v1556_v59 = vsel %vm349_vm1, %v1555_v58, 0.0 }
 0xa21   : > { %1557 = vadd.xlane.f32.xlu1 %v1556_v59 }
 0xaae   : > { %v1558_v60 = vpop.xlane.xlu1 %1557 }
 0xaaf   : > { %v1560_v61 = vmul.f32 0.03125, %v1558_v60 }
 0xab1   : > { %v1561_v62 = vsub.f32 %v1555_v58, %v1560_v61 }
 0xab3   : > { %v1562_v63 = vmul.f32 %v1561_v62, %v1561_v62 }
 0xab5   : > { %v1563_v0 = vsel %vm349_vm1, %v1562_v63, 0.0 }
 0xab6   : > { %1564 = vadd.xlane.f32.xlu0 %v1563_v0 }
 0xab7   : > { %1961 = shalt.err (!%p1958_p3)
}
 0xab8   : > { %s1962_s17 = scalar_lea.hbm %s2311_s24, 512  ;;  %s1966_s13 = scalar_lea.hbm %s2371_s8, 1024 }
 0xab9   : > { %p1963_p4 = scmp.ne.s32.totalorder %s2311_s24, %s1962_s17  ;;  %p1967_p9 = scmp.lt.u32.totalorder %s2311_s24, %s2371_s8 }
 0xaba   : > { %p1968_p10 = scmp.lt.u32.totalorder %s1966_s13, %s1962_s17  ;;  %p1970_p12 = scmp.lt.u32.totalorder %s1962_s17, %s2311_s24 }
 0xabb   : > { %p1964_p7 = pnand %p1963_p4, %p2105_p5 }
 0xabc   : > { %p1969_p11 = por %p1968_p10, %p1967_p9 }
 0xabd   : > { %p1965_p8 = pneg %p1964_p7 }
 0xabe   : > { %p1971_p13 = por %p1970_p12, %p1969_p11 }
 0xac0   : > { %p1972_p0 = pnand %p1971_p13, %p1965_p8 }
 0xac2   : > { %1975 = shalt.err (!%p1972_p0)
}
 0xac3   : > { %s2020_s26 = smov 128   ;;  %s2021_s9 = smov 8  }
 0xac4   : > { %1882 = dma.vmem_to_hbm [thread:$0]  (%p2105_p5), %s2313_s18, 512, %s2311_s24, %s2317_s25, %s2020_s26, %s2020_s26, %s2021_s9  }
 0xac5   : > { %s342_s17 = scalar_lea.vmem %s2370_s7, %s2148_s21 }
 0xb43   : > { %v1565_v15 = vpop.xlane.xlu0 %1564 }
 0xb44   : > { %v1566_v1 = vmul.f32 0.03125, %v1565_v15 }
 0xb46   : > { %v1567_v2 = vadd.f32 1e-05, %v1566_v1 }
 0xb48   : > { %1946 = vrsqrt.f32 %v1567_v2 }
 0xb52   : > { %v1947_v3 = vpop.eup %1946 }
 0xb53   : > { %v1569_v4 = vmul.f32 %v1947_v3, %v1561_v62 }
 0xb55   : > { %1570 = vst.msk [vmem:[%s342_s17] sm:$0xff] %vm349_vm1, %v1569_v4 }
 0xb56 PF: > { %p1888_p1 = scmp.ge.s32.totalorder %s2010_s30, 2  ;;  %s1614_s12 = sand.u32 1, %s1998_s27  }
 0xb57   : > { %s1615_s15 = scalar_lea.sflag [#allocation3], %s1614_s12 }
 0xb58   : > { %p1885_p5 = pnand %p1888_p1, %p2109_p6 }
 0xb5a   : > { %1993 = dma.done.wait (!%p1885_p5), %s1615_s15, 512  }
 0xb5b   : > { %1995 = vsyncadd (!%p1885_p5), %s1615_s15, 4294966784  ;;  %p19_p2 = scmp.ge.s32.totalorder %s2092_s11, 4   ;;  %s2376_s27 = smov %s2002_s28 }
 0xb5c   : > { %s2377_s28 = smov %s2006_s29  ;;  %s2378_s29 = smov %s2103_s14 }
 0xb5d   : > { %s2379_s30 = smov %s2092_s11  ;;  %21 = sbr.rel (!%p19_p2) target bundleno = 3 (0x3), region = 101 }
 0xb64   :  { %1620 = vsyncpa [#allocation3], 1 }
 0xb65   :  { %1622 = vsyncpa [#allocation3 + $0x1], 1 }

// kernel: transformer_forward.11
= control target key start
LH: loop header
LB: loop body
LE: loop exit
PB: predicated region body
PF: predicated region fallthrough
CT: control target
= control target key end

     0   :  { %14 = vsyncpa [#allocation3], 0  ;;  %s2350_s0 = inlined_call_operand.vmem [shape: f32[2,8,32], index: 0, kind: input, shape index: {}, may-alias: {0,1}]   ;;  %s2351_s1 = inlined_call_operand.vmem [shape: f32[2,8,32], index: 1, kind: input, shape index: {}, may-alias: {0,1}]   ;;  %s2352_s2 = inlined_call_operand.vmem [shape: f32[2,1,8], index: 2, kind: input, shape index: {}]   ;;  %s2353_s3 = inlined_call_operand.vmem [shape: f32[32,32], index: 3, kind: input, shape index: {}]   ;;  %s2354_s4 = inlined_call_operand.vmem [shape: f32[32,32], index: 4, kind: input, shape index: {}]   ;;  %s2355_s5 = inlined_call_operand.vmem [shape: f32[32,32], index: 5, kind: input, shape index: {}]   ;;  %s2356_s6 = inlined_call_operand.vmem [shape: f32[32,32], index: 6, kind: input, shape index: {}]   ;;  %s2357_s7 = inlined_call_operand.vmem [shape: f32[2,8,32], index: 7, kind: output, shape index: {0}]   ;;  %s2358_s8 = inlined_call_operand.hbm [shape: f32[2,32,8], index: 8, kind: output, shape index: {1}]  }
   0x1   :  { %16 = vsyncpa [#allocation3 + $0x1], 0  ;;  %s2061_s27 = smov 0   ;;  %s2063_s28 = smov 0  }
   0x2   :  { %s2065_s29 = smov 0   ;;  %s2067_s30 = smov 0  }
   0x3 LB: > { %s2082_s9 = sadd.s32 4294967295, %s2004_s30   ;;  %s1693_s10 = sadd.s32 4294967294, %s2004_s30   ;;  %s2004_s30 = sphi %s2067_s30, %s2364_s30   ;;  %s2000_s29 = sphi %s2065_s29, %s2363_s29   ;;  %s1996_s28 = sphi %s2063_s28, %s2362_s28   ;;  %s1992_s27 = sphi %s2061_s27, %s2361_s27  }
   0x4   : > { %s2086_s11 = sadd.s32 1, %s2004_s30   ;;  %s217_s12 = sadd.s32 1, %s2000_s29 }
   0x5   : > { %s214_s13 = ssub.s32 %s2004_s30, %s2086_s11  ;;  %p227_p0 = scmp.ne.s32.totalorder %s2000_s29, %s1996_s28 }
   0x6   : > { %p215_p1 = scmp.eq.s32.totalorder %s214_s13, 0  ;;  %p228_p2 = scmp.eq.s32.totalorder %s2082_s9, 1 }
   0x7   : > { %p233_p3 = scmp.ne.s32.totalorder %s1996_s28, %s1992_s27  ;;  %p234_p4 = scmp.eq.s32.totalorder %s1693_s10, 1 }
   0x8   : > { %s2097_s14 = scalar_select %p215_p1, %s2000_s29, %s217_s12  }
   0x9   : > { %p2099_p5 = por %p228_p2, %p227_p0  ;;  %p2103_p6 = por %p234_p4, %p233_p3 }
   0xa   : > { %p1696_p7 = scmp.ge.s32.totalorder %s2004_s30, 1  ;;  %p284_p8 = scmp.lt.s32.totalorder %s2004_s30, 3 }
   0xc   : > { %p285_p9 = pnand %p1696_p7, %p284_p8 }
   0xd   : > { %v423_v0 = vld [vmem:[%s2354_s4] sm:$0xff] (!%p285_p9)  ;;  %v424_v1 = vld [vmem:[%s2354_s4 + $0x8] sm:$0xff] (!%p285_p9)  ;;  %v2006_v3 = vmov (!%p285_p9), 0.0|0.0   ;;  %v425_v6 = vld [vmem:[%s2354_s4 + $0x10] sm:$0xff] (!%p285_p9)  ;;  %p328_p10 = scmp.lt.s32.totalorder (!%p285_p9), %s2082_s9, 1  ;;  %vm2007_vm0 = vmmov (!%p285_p9), 0   ;;  %v577_v30 = vlaneseq (!%p285_p9) }
   0xe   : > { %288 = sbr.rel (%p285_p9) target bundleno = 2902 (0xb56), region = 48  ;;  %v345_v2 = vld [vmem:[%s2353_s3] sm:$0xff] (!%p285_p9)  ;;  %1864 = vmatprep.subr.bf16.mxu1 (!%p285_p9), %v2006_v3  ;;  %v1865_v4 = vpack.c.bf16 (!%p285_p9), %v424_v1, %v423_v0  ;;  %1858 = vmatprep.subr.bf16.mxu0 (!%p285_p9), %v2006_v3  ;;  %v346_v5 = vld [vmem:[%s2353_s3 + $0x8] sm:$0xff] (!%p285_p9)  ;;  %v426_v7 = vld [vmem:[%s2354_s4 + $0x18] sm:$0xff] (!%p285_p9)  ;;  %v2008_v9 = vmov (!%p285_p9), 0.0   ;;  %vm349_vm1 = vcmask (!%p285_p9), 261120  }
   0xf   : > { %v1859_v8 = vpack.c.bf16 (!%p285_p9), %v346_v5, %v345_v2  ;;  %1784 = vmatprep.mubr.msk.f32.mxu1 (!%p285_p9), %vm2007_vm0, %v2008_v9  ;;  %v347_v10 = vld [vmem:[%s2353_s3 + $0x10] sm:$0xff] (!%p285_p9)  ;;  %v348_v11 = vld [vmem:[%s2353_s3 + $0x18] sm:$0xff] (!%p285_p9)  ;;  %1773 = vmatprep.mubr.msk.f32.mxu0 (!%p285_p9), %vm2007_vm0, %v2008_v9  ;;  %v1868_v12 = vpack.c.bf16 (!%p285_p9), %v426_v7, %v425_v6  ;;  %v500_v16 = vld [vmem:[%s2355_s5] sm:$0xff] (!%p285_p9)  ;;  %vm582_vm2 = vcmask (!%p285_p9), 64512   ;;  %s2009_s25 = smov (!%p285_p9), 120   ;;  %v578_v32 = vshrl.u32 (!%p285_p9), %v577_v30, 7 }
  0x10   : > { %1866 = vmatpush3.bf16.msra.mxu1 (!%p285_p9), %v1865_v4  ;;  %v1862_v13 = vpack.c.bf16 (!%p285_p9), %v348_v11, %v347_v10  ;;  %v501_v17 = vld [vmem:[%s2355_s5 + $0x8] sm:$0xff] (!%p285_p9)  ;;  %v502_v18 = vld [vmem:[%s2355_s5 + $0x10] sm:$0xff] (!%p285_p9)  ;;  %v503_v20 = vld [vmem:[%s2355_s5 + $0x18] sm:$0xff] (!%p285_p9)  ;;  %v2010_v34 = vmov (!%p285_p9), 0   ;;  %s2012_s13 = smov (!%p285_p9), 104   ;;  %s325_s17 = sand.u32 (!%p285_p9), 1, %s1996_s28  }
  0x11   : > { %1860 = vmatpush3.bf16.msra.mxu0 (!%p285_p9), %v1859_v8  ;;  %1867 = vmatprep.subr.bf16.mxu1 (!%p285_p9), %v2006_v3  ;;  %v1871_v19 = vpack.c.bf16 (!%p285_p9), %v501_v17, %v500_v16  ;;  %v1874_v21 = vpack.c.bf16 (!%p285_p9), %v503_v20, %v502_v18  ;;  %v579_v33 = vsub.s32 (!%p285_p9), 0, %v578_v32  ;;  %s1697_s18 = sshll.u32 (!%p285_p9), %s325_s17, 5  ;;  %v916_v60 = vld [vmem:[%s2356_s6 + $0x8] sm:$0xff] (!%p285_p9)  ;;  %v746_v1 = vld [vmem:[%s2356_s6] sm:$0xff] (!%p285_p9) }
  0x12   : > { %1861 = vmatprep.subr.bf16.mxu0 (!%p285_p9), %v2006_v3  ;;  %s2221_s19 = scalar_lea.vmem (!%p285_p9), [#allocation2], %s1697_s18 }
  0x13   : > { %s1586_s18 = sshll.u32 (!%p285_p9), %s2221_s19, 4  ;;  %s2300_s18 = int_to_ptr.vmem [resolvable:$true] %s1586_s18 }
  0x14   : > { %1869 = vmatpush3.bf16.msra.mxu1 (!%p285_p9), %v1868_v12  ;;  %s1942_s26 = scalar_lea.vmem (!%p285_p9), %s2300_s18, 512 }
  0x15   : > { %s2139_s20 = scalar_select %p328_p10, %s2082_s9, 1  ;;  %1863 = vmatpush3.bf16.msra.mxu0 %v1862_v13  ;;  %1798 = vmatprep.subr.mxu1 %v2008_v9 }
  0x16   : > { %1870 = vmatprep.subr.bf16.mxu0 %v2006_v3  ;;  %p1943_p11 = scmp.ne.s32.totalorder %s2300_s18, %s1942_s26 }
  0x17   : > { %s2142_s21 = sshll.u32 %s2139_s20, 3  ;;  %s338_s12 = scalar_lea.vmem %s2352_s2, %s2139_s20 }
  0x18   : > { %s335_s24 = scalar_lea.vmem %s2351_s1, %s2142_s21  ;;  %s331_s10 = scalar_lea.vmem %s2350_s0, %s2142_s21  ;;  %v574_v31 = vld [vmem:[%s338_s12] sm:$0x1] }
  0x19   : > { %v344_v14 = vld [vmem:[%s335_s24] sm:$0xff]  ;;  %vm575_vm3 = vcmp.gt.f32.partialorder %v574_v31, 0.5  ;;  %s2011_s20 = smov 112   ;;  %p1944_p12 = pnand %p1943_p11, %p2099_p5 }
  0x1a   : > { %v2152_v15 = vld [vmem:[%s331_s10] sm:$0xff]  ;;  %1785 = vmatmul.mubr.msk.f32.vlgmr.msra.gmra.mrb[0].mxu1 %vm349_vm1, %v344_v14  ;;  %v576_v35 = vsel %vm575_vm3, 1, %v2010_v34 }
  0x1b   : > { %1774 = vmatmul.mubr.msk.f32.vlgmr.msra.gmra.mrb[0].mxu0 %vm349_vm1, %v2152_v15  ;;  %1800 = vmatprep.mubr.msk.f32.mxu1 %vm2007_vm0, %v2008_v9  ;;  %v2202_v36 = vrot.slane %v576_v35, %v579_v33  ;;  %p1945_p13 = pneg %p1944_p12 }
  0x1c   : > { %1795 = vmatprep.mubr.msk.f32.mxu0 %vm2007_vm0, %v2008_v9  ;;  %1872 = vmatpush3.bf16.msra.mxu0 %v1871_v19 }
  0x1d   : > { %1873 = vmatprep.subr.bf16.mxu0 %v2006_v3  ;;  %vm581_vm4 = vcmp.eq.s32.totalorder %v2202_v36, 1 }
  0x20   : > { %1875 = vmatpush3.bf16.msra.mxu0 %v1874_v21 }
  0x21   : > { %1808 = vmatprep.subr.mxu0 %v2008_v9 }
  0x23   : > { %1796 = vmatmul.mubr.msk.f32.vlgmr.msra.gmra.mrb[2].mxu0 %vm349_vm1, %v344_v14 }
  0x24   : > { %1810 = vmatprep.mubr.msk.f32.mxu0 %vm2007_vm0, %v2008_v9 }
  0xed   : > { %v496_v22 = vpop.f32.mrb[0].mxu1 }
  0xee   : > { %749 = vrot.lane.b32.xlu0 %v496_v22, %s2009_s25  ;;  %v1786_v23 = vpop.f32.mrb[1].mxu1  ;;  %1799 = vmatpush3.xpose.msk.msra.mxu1 %vm582_vm2, %v496_v22  ;;  %v2180_v24 = vpop.f32.mrb[0].mxu0 }
  0xef   : > { %v1775_v25 = vpop.f32.mrb[1].mxu0  ;;  %1803 = vmatprep.subr.mxu1 %v2008_v9 }
  0xf1   : > { %1801 = vmatmul.mubr.msk.f32.vlgmr.msra.gmra.mrb[2].mxu1 %vm582_vm2, %v2180_v24 }
  0xf2   : > { %747 = vrot.lane.b32.xlu0 %v2180_v24, %s2009_s25  ;;  %1805 = vmatprep.mubr.msk.f32.mxu1 %vm2007_vm0, %v2008_v9 }
  0xf6   : > { %v2189_v26 = vpop.f32.mrb[2].mxu0 }
  0xf7   : > { %v1797_v27 = vpop.f32.mrb[3].mxu0  ;;  %1804 = vmatpush3.msra.mxu1 %v2189_v26 }
  0xf8   : > { %1813 = vmatprep.subr.mxu1 %v2008_v9 }
 0x160   : > { %v750_v28 = vpop.permute.xlu0 %749 }
 0x161   : > { %1809 = vmatpush3.xpose.msk.msra.mxu0 %vm582_vm2, %v750_v28 }
 0x162   : > { %1818 = vmatprep.subr.mxu0 %v2008_v9 }
 0x164   : > { %v748_v29 = vpop.permute.xlu0 %747 }
 0x165   : > { %1811 = vmatmul.mubr.msk.f32.vlgmr.msra.gmra.mrb[4].mxu0 %vm582_vm2, %v748_v29 }
 0x166   : > { %1820 = vmatprep.mubr.msk.f32.mxu0 %vm2007_vm0, %v2008_v9  ;;  %1819 = vmatpush3.msra.mxu0 %v916_v60 }
 0x167   : > { %1828 = vmatprep.subr.mxu0 %v2008_v9 }
 0x1c4   : > { %v655_v37 = vpop.f32.mrb[2].mxu1 }
 0x1c5   : > { %v659_v38 = vmul.f32 0.35355338, %v655_v37  ;;  %v1802_v39 = vpop.f32.mrb[3].mxu1 }
 0x1c7   : > { %v660_v40 = vsel %vm581_vm4, -1e+09, %v659_v38 }
 0x1c8   : > { %v661_v41 = vsel %vm582_vm2, %v660_v40, -inf }
 0x1c9   : > { %662 = vmax.xlane.f32.xlu1 %v661_v41 }
 0x238   : > { %v821_v42 = vpop.f32.mrb[4].mxu0 }
 0x239   : > { %v825_v43 = vmul.f32 0.35355338, %v821_v42  ;;  %v1812_v44 = vpop.f32.mrb[5].mxu0 }
 0x23b   : > { %v826_v45 = vsel %vm581_vm4, -1e+09, %v825_v43 }
 0x23c   : > { %v827_v46 = vsel %vm582_vm2, %v826_v45, -inf }
 0x23d   : > { %828 = vmax.xlane.f32.xlu1 %v827_v46 }
 0x256   : > { %v663_v47 = vpop.xlane.xlu1 %662 }
 0x257   : > { %v664_v48 = vsub.f32 %v660_v40, %v663_v47 }
 0x259   : > { %v665_v49 = vmul.f32 1.442695, %v664_v48 }
 0x25b   : > { %1924 = vpow2.f32 %v665_v49 }
 0x265   : > { %v1925_v50 = vpop.eup %1924 }
 0x266   : > { %v667_v51 = vsel %vm582_vm2, %v1925_v50, 0.0 }
 0x267   : > { %668 = vadd.xlane.f32.xlu0 %v667_v51 }
 0x27d   : > { %1155 = vrot.lane.b32.xlu0 %v2189_v26, %s2011_s20 }
 0x281   : > { %1308 = vrot.lane.b32.xlu0 %v496_v22, %s2012_s13 }
 0x2ca   : > { %v829_v52 = vpop.xlane.xlu1 %828 }
 0x2cb   : > { %v830_v53 = vsub.f32 %v826_v45, %v829_v52 }
 0x2cd   : > { %v831_v54 = vmul.f32 1.442695, %v830_v53 }
 0x2cf   : > { %1926 = vpow2.f32 %v831_v54 }
 0x2d9   : > { %v1927_v55 = vpop.eup %1926 }
 0x2da   : > { %v833_v56 = vsel %vm582_vm2, %v1927_v55, 0.0 }
 0x2db   : > { %834 = vadd.xlane.f32.xlu1 %v833_v56 }
 0x2ec   : > { %840 = vrot.lane.b32.xlu1 %v2189_v26, %s2009_s25  ;;  %s2304_s25 = scalar_lea.sflag [#allocation3], %s325_s17 }
 0x2f0   : > { %1065 = vrot.lane.b32.xlu1 %v496_v22, %s2011_s20 }
 0x2f4   : > { %v669_v57 = vpop.xlane.xlu0 %668  ;;  %1063 = vrot.lane.b32.xlu1 %v2180_v24, %s2011_s20 }
 0x2f5   : > { %1928 = vrcp.f32 %v669_v57 }
 0x2f8   : > { %v1156_v3 = vpop.permute.xlu0 %1155 }
 0x2fc   : > { %v1309_v28 = vpop.permute.xlu0 %1308 }
 0x2ff   : > { %v1929_v58 = vpop.eup %1928 }
 0x300   : > { %v671_v59 = vmul.f32 %v1929_v58, %v1925_v50 }
 0x302   : > { %672 = vst.msk [vmem:[%s2221_s19] sm:$0xff] %vm582_vm2, %v671_v59  ;;  %1806 = vmatmul.mubr.msk.f32.vlgmr.msra.gmra.mrb[4].mxu1 %vm582_vm2, %v671_v59 }
 0x303   : > { %1815 = vmatprep.mubr.msk.f32.mxu1 %vm2007_vm0, %v2008_v9 }
 0x368   : > { %v835_v61 = vpop.xlane.xlu1 %834 }
 0x369   : > { %1930 = vrcp.f32 %v835_v61 }
 0x36c   : > { %v841_v62 = vpop.permute.xlu1 %840 }
 0x36d   : > { %1814 = vmatpush3.msra.mxu1 %v841_v62 }
 0x36e   : > { %1823 = vmatprep.subr.mxu1 %v2008_v9 }
 0x370   : > { %v1066_v5 = vpop.permute.xlu1 %1065 }
 0x373   : > { %v1931_v63 = vpop.eup %1930 }
 0x374   : > { %v837_v0 = vmul.f32 %v1931_v63, %v1927_v55  ;;  %v1064_v8 = vpop.permute.xlu1 %1063 }
 0x376   : > { %838 = vst.msk [vmem:[%s2221_s19 + $0x8] sm:$0xff] %vm582_vm2, %v837_v0  ;;  %1816 = vmatmul.mubr.msk.f32.vlgmr.msra.gmra.mrb[6].mxu1 %vm582_vm2, %v837_v0 }
 0x377   : > { %1824 = vmatpush3.msra.mxu1 %v746_v1  ;;  %1825 = vmatprep.mubr.msk.f32.mxu1 %vm2007_vm0, %v2008_v9 }
 0x378   : > { %1833 = vmatprep.subr.mxu1 %v2008_v9 }
 0x3d5   : > { %v742_v2 = vpop.f32.mrb[4].mxu1 }
 0x3d6   : > { %v1807_v4 = vpop.f32.mrb[5].mxu1  ;;  %1826 = vmatmul.mubr.msk.f32.vlgmr.msra.gmra.mrb[8].mxu1 %vm582_vm2, %v742_v2 }
 0x3d7   : > { %1834 = vmatpush3.msra.mxu1 %v1156_v3  ;;  %1835 = vmatprep.mubr.msk.f32.mxu1 %vm2007_vm0, %v2008_v9 }
 0x3d8   : > { %1843 = vmatprep.subr.mxu1 %v2008_v9 }
 0x449   : > { %v912_v6 = vpop.f32.mrb[6].mxu1 }
 0x44a   : > { %v1817_v7 = vpop.f32.mrb[7].mxu1  ;;  %1821 = vmatmul.mubr.msk.f32.vlgmr.msra.gmra.mrb[6].mxu0 %vm582_vm2, %v912_v6 }
 0x44b   : > { %1829 = vmatpush3.xpose.msk.msra.mxu0 %vm582_vm2, %v1066_v5  ;;  %1830 = vmatprep.mubr.msk.f32.mxu0 %vm2007_vm0, %v2008_v9 }
 0x44c   : > { %1838 = vmatprep.subr.mxu0 %v2008_v9 }
 0x44e   : > { %1831 = vmatmul.mubr.msk.f32.vlgmr.msra.gmra.mrb[8].mxu0 %vm582_vm2, %v1064_v8 }
 0x44f   : > { %1840 = vmatprep.mubr.msk.f32.mxu0 %vm2007_vm0, %v2008_v9 }
 0x4a9   : > { %v1059_v10 = vpop.f32.mrb[8].mxu1 }
 0x4aa   : > { %v1827_v11 = vpop.f32.mrb[9].mxu1 }
 0x51d   : > { %v986_v12 = vpop.f32.mrb[6].mxu0 }
 0x51e   : > { %v1060_v13 = vadd.f32 %v1059_v10, %v986_v12  ;;  %v1822_v14 = vpop.f32.mrb[7].mxu0 }
 0x521   : > { %v1137_v16 = vpop.f32.mrb[8].mxu0 }
 0x522   : > { %v1141_v17 = vmul.f32 0.35355338, %v1137_v16  ;;  %v1832_v18 = vpop.f32.mrb[9].mxu0 }
 0x524   : > { %v1142_v19 = vsel %vm581_vm4, -1e+09, %v1141_v17 }
 0x525   : > { %v1143_v20 = vsel %vm582_vm2, %v1142_v19, -inf }
 0x526   : > { %1144 = vmax.xlane.f32.xlu1 %v1143_v20 }
 0x5b3   : > { %v1145_v21 = vpop.xlane.xlu1 %1144 }
 0x5b4   : > { %v1146_v22 = vsub.f32 %v1142_v19, %v1145_v21 }
 0x5b6   : > { %v1147_v23 = vmul.f32 1.442695, %v1146_v22 }
 0x5b8   : > { %1932 = vpow2.f32 %v1147_v23 }
 0x5c2   : > { %v1933_v25 = vpop.eup %1932 }
 0x5c3   : > { %v1149_v27 = vsel %vm582_vm2, %v1933_v25, 0.0 }
 0x5c4   : > { %1150 = vadd.xlane.f32.xlu0 %v1149_v27 }
 0x5da   : > { %1306 = vrot.lane.b32.xlu0 %v2180_v24, %s2012_s13  ;;  %v1231_v24 = vld [vmem:[%s2356_s6 + $0x10] sm:$0xff] }
 0x5db   : > { %1839 = vmatpush3.msra.mxu0 %v1231_v24 }
 0x5dc   : > { %1848 = vmatprep.subr.mxu0 %v2008_v9 }
 0x651   : > { %v1151_v29 = vpop.xlane.xlu0 %1150 }
 0x652   : > { %1934 = vrcp.f32 %v1151_v29 }
 0x655   : > { %v1307_v32 = vpop.permute.xlu0 %1306 }
 0x65c   : > { %v1935_v30 = vpop.eup %1934 }
 0x65d   : > { %v1153_v31 = vmul.f32 %v1935_v30, %v1933_v25 }
 0x65f   : > { %1154 = vst.msk [vmem:[%s2221_s19 + $0x10] sm:$0xff] %vm582_vm2, %v1153_v31  ;;  %1836 = vmatmul.mubr.msk.f32.vlgmr.msra.gmra.mrb[10].mxu1 %vm582_vm2, %v1153_v31 }
 0x660   : > { %1844 = vmatpush3.xpose.msk.msra.mxu1 %vm582_vm2, %v1309_v28  ;;  %1845 = vmatprep.mubr.msk.f32.mxu1 %vm2007_vm0, %v2008_v9 }
 0x661   : > { %1853 = vmatprep.subr.mxu1 %v2008_v9 }
 0x663   : > { %1846 = vmatmul.mubr.msk.f32.vlgmr.msra.gmra.mrb[12].mxu1 %vm582_vm2, %v1307_v32 }
 0x664   : > { %1855 = vmatprep.mubr.msk.f32.mxu1 %vm2007_vm0, %v2008_v9 }
 0x732   : > { %v1227_v33 = vpop.f32.mrb[10].mxu1 }
 0x733   : > { %v1837_v34 = vpop.f32.mrb[11].mxu1  ;;  %1841 = vmatmul.mubr.msk.f32.vlgmr.msra.gmra.mrb[10].mxu0 %vm582_vm2, %v1227_v33 }
 0x734   : > { %1850 = vmatprep.mubr.msk.f32.mxu0 %vm2007_vm0, %v2008_v9  ;;  %v1474_v9 = vld [vmem:[%s2356_s6 + $0x18] sm:$0xff] }
 0x735   : > { %1854 = vmatpush3.msra.mxu1 %v1474_v9 }
 0x736   : > { %v1380_v35 = vpop.f32.mrb[12].mxu1 }
 0x737   : > { %v1384_v37 = vmul.f32 0.35355338, %v1380_v35  ;;  %v1847_v38 = vpop.f32.mrb[13].mxu1 }
 0x739   : > { %v1385_v39 = vsel %vm581_vm4, -1e+09, %v1384_v37 }
 0x73a   : > { %v1386_v40 = vsel %vm582_vm2, %v1385_v39, -inf }
 0x73b   : > { %1387 = vmax.xlane.f32.xlu0 %v1386_v40 }
 0x7c8   : > { %v1388_v41 = vpop.xlane.xlu0 %1387 }
 0x7c9   : > { %v1389_v42 = vsub.f32 %v1385_v39, %v1388_v41 }
 0x7cb   : > { %v1390_v43 = vmul.f32 1.442695, %v1389_v42 }
 0x7cd   : > { %1936 = vpow2.f32 %v1390_v43 }
 0x7d7   : > { %v1937_v44 = vpop.eup %1936 }
 0x7d8   : > { %v1392_v45 = vsel %vm582_vm2, %v1937_v44, 0.0 }
 0x7d9   : > { %1393 = vadd.xlane.f32.xlu1 %v1392_v45 }
 0x7ea   : > { %1398 = vrot.lane.b32.xlu1 %v2189_v26, %s2012_s13  ;;  %s1725_s13 = sshll.u32 %s2082_s9, 9  ;;  %s2013_s9 = smov [#allocation2]  }
 0x7eb   : > { %s2298_s24 = scalar_lea.hbm %s2358_s8, %s1725_s13 }
 0x806   : > { %v1301_v36 = vpop.f32.mrb[10].mxu0 }
 0x807   : > { %v1305_v46 = vadd.f32 %v1301_v36, %v1060_v13  ;;  %v1842_v47 = vpop.f32.mrb[11].mxu0 }
 0x866   : > { %v1394_v48 = vpop.xlane.xlu1 %1393 }
 0x867   : > { %1938 = vrcp.f32 %v1394_v48 }
 0x86a   : > { %v1399_v49 = vpop.permute.xlu1 %1398 }
 0x86b   : > { %1849 = vmatpush3.msra.mxu0 %v1399_v49 }
 0x871   : > { %v1939_v50 = vpop.eup %1938 }
 0x872   : > { %v1396_v51 = vmul.f32 %v1939_v50, %v1937_v44 }
 0x874   : > { %1397 = vst.msk [vmem:[%s2221_s19 + $0x18] sm:$0xff] %vm582_vm2, %v1396_v51  ;;  %1851 = vmatmul.mubr.msk.f32.vlgmr.msra.gmra.mrb[12].mxu0 %vm582_vm2, %v1396_v51  ;;  %s1946_s19 = sshll.u32 %s2013_s9, 4  ;;  %s1947_s19 = int_to_ptr.vmem [resolvable:$false] %s1946_s19 }
 0x875   : > { %s1948_s10 = scalar_lea.vmem %s1947_s19, 1024  ;;  %p1949_p0 = scmp.lt.s32.totalorder %s2300_s18, %s1947_s19 }
 0x876   : > { %p1950_p1 = scmp.lt.s32.totalorder %s1948_s10, %s1942_s26 }
 0x878   : > { %p1951_p2 = por %p1950_p1, %p1949_p0 }
 0x87a   : > { %p1952_p3 = pnand %p1951_p2, %p1945_p13 }
 0x947   : > { %v1470_v26 = vpop.f32.mrb[12].mxu0 }
 0x948   : > { %v1852_v52 = vpop.f32.mrb[13].mxu0  ;;  %1856 = vmatmul.mubr.msk.f32.vlgmr.msra.gmra.mrb[14].mxu1 %vm582_vm2, %v1470_v26 }
 0xa1b   : > { %v1544_v53 = vpop.f32.mrb[14].mxu1 }
 0xa1c   : > { %v1548_v54 = vadd.f32 %v1544_v53, %v1305_v46  ;;  %v1857_v55 = vpop.f32.mrb[15].mxu1 }
 0xa1e   : > { %v1549_v56 = vadd.f32 %v1548_v54, %v2152_v15 }
 0xa20   : > { %v1550_v57 = vsel %vm349_vm1, %v1549_v56, 0.0 }
 0xa21   : > { %1551 = vadd.xlane.f32.xlu1 %v1550_v57 }
 0xaae   : > { %v1552_v58 = vpop.xlane.xlu1 %1551 }
 0xaaf   : > { %v1554_v59 = vmul.f32 0.03125, %v1552_v58 }
 0xab1   : > { %v1555_v60 = vsub.f32 %v1549_v56, %v1554_v59 }
 0xab3   : > { %v1556_v61 = vmul.f32 %v1555_v60, %v1555_v60 }
 0xab5   : > { %v1557_v62 = vsel %vm349_vm1, %v1556_v61, 0.0 }
 0xab6   : > { %1558 = vadd.xlane.f32.xlu0 %v1557_v62 }
 0xab7   : > { %1955 = shalt.err (!%p1952_p3)
}
 0xab8   : > { %s1956_s17 = scalar_lea.hbm %s2298_s24, 512  ;;  %s1960_s13 = scalar_lea.hbm %s2358_s8, 1024 }
 0xab9   : > { %p1957_p4 = scmp.ne.s32.totalorder %s2298_s24, %s1956_s17  ;;  %p1961_p9 = scmp.lt.u32.totalorder %s2298_s24, %s2358_s8 }
 0xaba   : > { %p1962_p10 = scmp.lt.u32.totalorder %s1960_s13, %s1956_s17  ;;  %p1964_p12 = scmp.lt.u32.totalorder %s1956_s17, %s2298_s24 }
 0xabb   : > { %p1958_p7 = pnand %p1957_p4, %p2099_p5 }
 0xabc   : > { %p1963_p11 = por %p1962_p10, %p1961_p9 }
 0xabd   : > { %p1959_p8 = pneg %p1958_p7 }
 0xabe   : > { %p1965_p13 = por %p1964_p12, %p1963_p11 }
 0xac0   : > { %p1966_p0 = pnand %p1965_p13, %p1959_p8 }
 0xac2   : > { %1969 = shalt.err (!%p1966_p0)
}
 0xac3   : > { %s2014_s26 = smov 128   ;;  %s2015_s9 = smov 8  }
 0xac4   : > { %1876 = dma.vmem_to_hbm [thread:$0]  (%p2099_p5), %s2300_s18, 512, %s2298_s24, %s2304_s25, %s2014_s26, %s2014_s26, %s2015_s9  }
 0xac5   : > { %s342_s17 = scalar_lea.vmem %s2357_s7, %s2142_s21 }
 0xb43   : > { %v1559_v15 = vpop.xlane.xlu0 %1558 }
 0xb44   : > { %v1560_v63 = vmul.f32 0.03125, %v1559_v15 }
 0xb46   : > { %v1561_v0 = vadd.f32 1e-05, %v1560_v63 }
 0xb48   : > { %1940 = vrsqrt.f32 %v1561_v0 }
 0xb52   : > { %v1941_v1 = vpop.eup %1940 }
 0xb53   : > { %v1563_v2 = vmul.f32 %v1941_v1, %v1555_v60 }
 0xb55   : > { %1564 = vst.msk [vmem:[%s342_s17] sm:$0xff] %vm349_vm1, %v1563_v2 }
 0xb56 PF: > { %p1882_p1 = scmp.ge.s32.totalorder %s2004_s30, 2  ;;  %s1608_s12 = sand.u32 1, %s1992_s27  }
 0xb57   : > { %s1609_s15 = scalar_lea.sflag [#allocation3], %s1608_s12 }
 0xb58   : > { %p1879_p5 = pnand %p1882_p1, %p2103_p6 }
 0xb5a   : > { %1987 = dma.done.wait (!%p1879_p5), %s1609_s15, 512  }
 0xb5b   : > { %1989 = vsyncadd (!%p1879_p5), %s1609_s15, 4294966784  ;;  %p19_p2 = scmp.ge.s32.totalorder %s2086_s11, 4   ;;  %s2361_s27 = smov %s1996_s28 }
 0xb5c   : > { %s2362_s28 = smov %s2000_s29  ;;  %s2363_s29 = smov %s2097_s14 }
 0xb5d   : > { %s2364_s30 = smov %s2086_s11  ;;  %21 = sbr.rel (!%p19_p2) target bundleno = 3 (0x3), region = 101 }
 0xb64   :  { %1614 = vsyncpa [#allocation3], 1 }
 0xb65   :  { %1616 = vsyncpa [#allocation3 + $0x1], 1 }

</bundles_post_ra>
